<compile_context>
chip_gen: v7x
topology: tpu7x:2x2x1
jax: 0.10.0
libtpu: 0.0.40
codegen_flags: <defaults>
</compile_context>

<pallas_src>
import functools

import jax
import jax.numpy as jnp
from jax import lax
from jax.experimental import pallas as pl
from jax.experimental.pallas import tpu as pltpu

_K = 7        # Conv1d kernel size
_PAD = 3      # Conv1d padding
_HALO = 16    # input halo rows per side (>= _MARGIN + _PAD, bf16 sublane aligned)
_MARGIN = 4   # rows of the intermediate activation recomputed per side (>= _PAD)


def _basic_block1d_kernel(x_ref, xl_ref, xr_ref, w1_ref, b1_ref, w2_ref, b2_ref,
                          o_ref, *, l_tile, l_total, compute_dtype):
    t = pl.program_id(1)
    n_t = pl.num_programs(1)

    x_c = x_ref[0]                                     # (l_tile, C)  compute dtype
    # Zero the halos that fall outside the sequence (Conv1d padding=3 semantics).
    x_l = xl_ref[0] * (t > 0).astype(x_ref.dtype)      # (_HALO, C)
    x_r = xr_ref[0] * (t < n_t - 1).astype(x_ref.dtype)

    # Input window covering global positions [s - _HALO, s + l_tile + _HALO).
    x_win = jnp.concatenate([x_l, x_c, x_r], axis=0)   # (l_tile + 2*_HALO, C)

    f32 = jnp.float32
    prec = (lax.Precision.HIGHEST
            if jnp.dtype(compute_dtype) == jnp.dtype(jnp.float32)
            else lax.Precision.DEFAULT)

    # ---- conv1 (+ folded bn1) + ReLU over positions [s - _MARGIN, s + l_tile + _MARGIN)
    y_rows = l_tile + 2 * _MARGIN
    c_out = w1_ref.shape[2]
    off1 = _HALO - _MARGIN - _PAD                      # = 9
    acc = jnp.broadcast_to(b1_ref[...].astype(f32), (y_rows, c_out))
    for d in range(_K):                                # statically unrolled: 7 shifted MXU matmuls
        acc = acc + jnp.dot(x_win[off1 + d:off1 + d + y_rows, :], w1_ref[d],
                            preferred_element_type=f32, precision=prec)
    y1 = jnp.maximum(acc, 0.0)

    # conv2 zero-pads its input: zero rows whose global position is outside [0, L).
    row = lax.broadcasted_iota(jnp.int32, (y_rows, 1), 0)
    pos = row + (t * l_tile - _MARGIN)
    y1 = jnp.where((pos >= 0) & (pos < l_total), y1, 0.0)
    # TODO(synk): dropout(p=0.2) is the eval-mode identity; training-mode RNG masking not implemented.
    y1 = y1.astype(compute_dtype)

    # ---- conv2 (+ folded bn2) over positions [s, s + l_tile)
    off2 = _MARGIN - _PAD                              # = 1
    acc = jnp.broadcast_to(b2_ref[...].astype(f32), (l_tile, c_out))
    for d in range(_K):
        acc = acc + jnp.dot(y1[off2 + d:off2 + d + l_tile, :], w2_ref[d],
                            preferred_element_type=f32, precision=prec)

    # Residual add (raw input block) + final ReLU in f32; cast only at the store.
    out = jnp.maximum(acc + x_c.astype(f32), 0.0)
    o_ref[0] = out.astype(o_ref.dtype)


def _vmem_capacity_bytes():
    try:
        return int(pltpu.get_tpu_info().vmem_capacity_bytes)
    except Exception:
        return 64 * 1024 * 1024          # conservative (v7x-sized) fallback


def _choose_l_tile(seq_len, channels, compute_dtype, vmem_cap):
    itemsize = jnp.dtype(compute_dtype).itemsize
    # Rough per-row VMEM footprint: double-buffered in/out blocks, the input
    # window, the f32 intermediate activation and f32 accumulators.
    per_row = channels * (4 * itemsize + 2 * 4 + 3 * 4)
    budget = vmem_cap // 6
    target = max(_HALO, min(2048, budget // max(per_row, 1)))
    target -= target % _HALO
    if seq_len <= target:
        return seq_len
    for cand in range(target, _HALO - 1, -_HALO):
        if seq_len % cand == 0:
            return cand
    return seq_len                       # fall back to a single tile over L


def basic_block1d_forward(x, conv1_w, bn1_params, conv2_w, bn2_params, *,
                          eps=1e-5, compute_dtype=jnp.bfloat16, l_tile=None):
    """Fused BasicBlock1d forward (inference). x: (B, C, L) in PyTorch NCL layout."""
    batch, c_in, seq_len = x.shape
    c_out = conv1_w.shape[0]
    if conv1_w.shape != (c_out, c_in, _K) or conv2_w.shape != (c_out, c_out, _K):
        raise ValueError("unexpected conv weight shapes")
    if c_in != c_out:
        raise ValueError("downsample=None requires inplanes == planes")
    if seq_len < _HALO:
        raise ValueError(f"sequence length must be >= {_HALO}")

    g1, beta1, m1, v1 = (jnp.asarray(a, jnp.float32) for a in bn1_params)
    g2, beta2, m2, v2 = (jnp.asarray(a, jnp.float32) for a in bn2_params)

    # Fold BatchNorm (running stats) into the conv weights and a per-channel bias.
    s1 = g1 / jnp.sqrt(v1 + eps)
    s2 = g2 / jnp.sqrt(v2 + eps)
    w1 = jnp.transpose(conv1_w.astype(jnp.float32), (2, 1, 0)) * s1[None, None, :]
    w2 = jnp.transpose(conv2_w.astype(jnp.float32), (2, 1, 0)) * s2[None, None, :]
    b1 = (beta1 - m1 * s1).reshape(1, c_out)
    b2 = (beta2 - m2 * s2).reshape(1, c_out)

    x_nlc = jnp.transpose(x, (0, 2, 1))                 # (B, L, C): channels on lanes
    xc = x_nlc.astype(compute_dtype)
    w1c = w1.astype(compute_dtype)
    w2c = w2.astype(compute_dtype)

    vmem_cap = _vmem_capacity_bytes()
    if l_tile is None:
        l_tile = _choose_l_tile(seq_len, c_out, compute_dtype, vmem_cap)
    if l_tile != seq_len and (seq_len % l_tile or l_tile % _HALO):
        raise ValueError(f"l_tile must divide L and be a multiple of {_HALO} (or equal L)")
    n_tiles = seq_len // l_tile

    bpt = max(l_tile // _HALO, 1)                       # halo blocks per tile
    max_halo_idx = max((seq_len - _HALO) // _HALO, 0)

    def x_map(b, t):
        return (b, t, 0)

    def xl_map(b, t):                                   # clamped left-halo block
        return (b, jnp.maximum(t * bpt - 1, 0), 0)

    def xr_map(b, t):                                   # clamped right-halo block
        return (b, jnp.minimum((t + 1) * bpt, max_halo_idx), 0)

    const3 = lambda b, t: (0, 0, 0)
    const2 = lambda b, t: (0, 0)

    kernel = functools.partial(_basic_block1d_kernel, l_tile=l_tile,
                               l_total=seq_len, compute_dtype=compute_dtype)

    grid_spec = pltpu.PrefetchScalarGridSpec(
        num_scalar_prefetch=0,
        grid=(batch, n_tiles),
        in_specs=[
            pl.BlockSpec((1, l_tile, c_in), x_map),      # current tile of x (also residual)
            pl.BlockSpec((1, _HALO, c_in), xl_map),      # left halo
            pl.BlockSpec((1, _HALO, c_in), xr_map),      # right halo
            pl.BlockSpec((_K, c_in, c_out), const3),     # folded conv1 weights
            pl.BlockSpec((1, c_out), const2),            # folded bn1 bias
            pl.BlockSpec((_K, c_out, c_out), const3),    # folded conv2 weights
            pl.BlockSpec((1, c_out), const2),            # folded bn2 bias
        ],
        out_specs=pl.BlockSpec((1, l_tile, c_out), x_map),
    )

    out_nlc = pl.pallas_call(
        kernel,
        out_shape=jax.ShapeDtypeStruct((batch, seq_len, c_out), x.dtype),
        grid_spec=grid_spec,
        compiler_params=pltpu.CompilerParams(
            dimension_semantics=("parallel", "parallel"),
            vmem_limit_bytes=int(min(vmem_cap * 3 // 4, 100 * 1024 * 1024)),
        ),
    )(xc, xc, xc, w1c, b1, w2c, b2)

    return jnp.transpose(out_nlc, (0, 2, 1))            # back to (B, C, L)


def basic_block1d_reference(x, conv1_w, bn1_params, conv2_w, bn2_params, eps=1e-5):
    """Pure-JAX reference matching the PyTorch module in eval mode."""
    def conv(inp, w):
        return lax.conv_general_dilated(
            inp, w, window_strides=(1,), padding=[(_PAD, _PAD)],
            dimension_numbers=("NCH", "OIH", "NCH"),
            precision=lax.Precision.HIGHEST)

    def bn(inp, params):
        g, b, m, v = params
        scale = g / jnp.sqrt(v + eps)
        return inp * scale[None, :, None] + (b - m * scale)[None, :, None]

    y = jnp.maximum(bn(conv(x, conv1_w), bn1_params), 0.0)
    y = bn(conv(y, conv2_w), bn2_params)
    return jnp.maximum(y + x, 0.0)


if __name__ == "__main__":
    key = jax.random.PRNGKey(0)
    batch, channels, seq_len = 2, 16, 64

    ks = jax.random.split(key, 11)
    x = jax.random.normal(ks[0], (batch, channels, seq_len), jnp.float32)
    conv1_w = 0.1 * jax.random.normal(ks[1], (channels, channels, _K), jnp.float32)
    conv2_w = 0.1 * jax.random.normal(ks[2], (channels, channels, _K), jnp.float32)
    bn1 = (1.0 + 0.1 * jax.random.normal(ks[3], (channels,), jnp.float32),
           0.1 * jax.random.normal(ks[4], (channels,), jnp.float32),
           0.1 * jax.random.normal(ks[5], (channels,), jnp.float32),
           1.0 + 0.5 * jax.random.uniform(ks[6], (channels,), jnp.float32))
    bn2 = (1.0 + 0.1 * jax.random.normal(ks[7], (channels,), jnp.float32),
           0.1 * jax.random.normal(ks[8], (channels,), jnp.float32),
           0.1 * jax.random.normal(ks[9], (channels,), jnp.float32),
           1.0 + 0.5 * jax.random.uniform(ks[10], (channels,), jnp.float32))

    ref = jax.block_until_ready(basic_block1d_reference(x, conv1_w, bn1, conv2_w, bn2))

    # f32 compute path on a multi-tile grid (exercises halo / edge masking).
    out_f32 = jax.block_until_ready(
        basic_block1d_forward(x, conv1_w, bn1, conv2_w, bn2,
                              compute_dtype=jnp.float32, l_tile=16))
    assert out_f32.shape == x.shape and out_f32.dtype == x.dtype
    err_f32 = float(jnp.max(jnp.abs(out_f32 - ref)))
    if not err_f32 < 1e-3:
        raise AssertionError(f"f32 path mismatch: max abs err {err_f32}")

    # bf16 MXU path (default compute dtype), different tiling.
    out_bf16 = jax.block_until_ready(
        basic_block1d_forward(x, conv1_w, bn1, conv2_w, bn2,
                              compute_dtype=jnp.bfloat16, l_tile=32))
    err_bf16 = float(jnp.max(jnp.abs(out_bf16 - ref)))
    if not err_bf16 < 1e-1:
        raise AssertionError(f"bf16 path mismatch: max abs err {err_bf16}")

    print("KERNEL_OK")
</pallas_src>

<mosaic_0001>
module attributes {stable_mosaic.version = 11 : i64} {
  func.func @_basic_block1d_kernel(%arg0: i32, %arg1: i32, %arg2: memref<1x16x16xf32, #tpu.memory_space<vmem>>, %arg3: memref<1x16x16xf32, #tpu.memory_space<vmem>>, %arg4: memref<1x16x16xf32, #tpu.memory_space<vmem>>, %arg5: memref<7x16x16xf32, #tpu.memory_space<vmem>>, %arg6: memref<1x16xf32, #tpu.memory_space<vmem>>, %arg7: memref<7x16x16xf32, #tpu.memory_space<vmem>>, %arg8: memref<1x16xf32, #tpu.memory_space<vmem>>, %arg9: memref<1x16x16xf32, #tpu.memory_space<vmem>>) attributes {dimension_semantics = [#tpu.dimension_semantics<parallel>, #tpu.dimension_semantics<parallel>], iteration_bounds = array<i64: 2, 4>, scalar_prefetch = 0 : i64, scratch_operands = 0 : i64, tpu.core_type = #tpu.core_type<tc>, window_params = [{transform_indices = @transform_0, window_bounds = array<i64: 1, 16, 16>}, {transform_indices = @transform_1, window_bounds = array<i64: 1, 16, 16>}, {transform_indices = @transform_2, window_bounds = array<i64: 1, 16, 16>}, {pipeline_mode = #tpu.pipeline_mode<synchronous>, transform_indices = @transform_3, window_bounds = array<i64: 7, 16, 16>}, {pipeline_mode = #tpu.pipeline_mode<synchronous>, transform_indices = @transform_4, window_bounds = array<i64: 1, 16>}, {pipeline_mode = #tpu.pipeline_mode<synchronous>, transform_indices = @transform_5, window_bounds = array<i64: 7, 16, 16>}, {pipeline_mode = #tpu.pipeline_mode<synchronous>, transform_indices = @transform_6, window_bounds = array<i64: 1, 16>}, {transform_indices = @transform_7, window_bounds = array<i64: 1, 16, 16>}]} {
    %c0 = arith.constant 0 : index
    %c0_0 = arith.constant 0 : index
    %c0_1 = arith.constant 0 : index
    %0 = vector.load %arg2[%c0, %c0_0, %c0_1] : memref<1x16x16xf32, #tpu.memory_space<vmem>>, vector<1x16x16xf32>
    %1 = vector.shape_cast %0 : vector<1x16x16xf32> to vector<16x16xf32>
    %c0_2 = arith.constant 0 : index
    %c0_3 = arith.constant 0 : index
    %c0_4 = arith.constant 0 : index
    %2 = vector.load %arg3[%c0_2, %c0_3, %c0_4] : memref<1x16x16xf32, #tpu.memory_space<vmem>>, vector<1x16x16xf32>
    %3 = vector.shape_cast %2 : vector<1x16x16xf32> to vector<16x16xf32>
    %c0_i32 = arith.constant 0 : i32
    %4 = arith.cmpi sgt, %arg1, %c0_i32 : i32
    %5 = arith.extui %4 : i1 to i32
    %6 = arith.sitofp %5 : i32 to f32
    %7 = vector.broadcast %6 : f32 to vector<16x16xf32>
    %8 = arith.mulf %3, %7 : vector<16x16xf32>
    %c0_5 = arith.constant 0 : index
    %c0_6 = arith.constant 0 : index
    %c0_7 = arith.constant 0 : index
    %9 = vector.load %arg4[%c0_5, %c0_6, %c0_7] : memref<1x16x16xf32, #tpu.memory_space<vmem>>, vector<1x16x16xf32>
    %10 = vector.shape_cast %9 : vector<1x16x16xf32> to vector<16x16xf32>
    %c3_i32 = arith.constant 3 : i32
    %11 = arith.cmpi slt, %arg1, %c3_i32 : i32
    %12 = arith.extui %11 : i1 to i32
    %13 = arith.sitofp %12 : i32 to f32
    %14 = vector.broadcast %13 : f32 to vector<16x16xf32>
    %15 = arith.mulf %10, %14 : vector<16x16xf32>
    %16 = tpu.concatenate %8, %1, %15 in 0 : vector<16x16xf32>, vector<16x16xf32>, vector<16x16xf32> -> vector<48x16xf32>
    %c0_8 = arith.constant 0 : index
    %c0_9 = arith.constant 0 : index
    %17 = vector.load %arg6[%c0_8, %c0_9] : memref<1x16xf32, #tpu.memory_space<vmem>>, vector<1x16xf32>
    %18 = vector.shape_cast %17 : vector<1x16xf32> to vector<1x16xf32>
    %19 = vector.broadcast %18 : vector<1x16xf32> to vector<24x16xf32>
    %20 = vector.extract_strided_slice %16 {offsets = [9, 0], sizes = [24, 16], strides = [1, 1]} : vector<48x16xf32> to vector<24x16xf32>
    %c0_10 = arith.constant 0 : index
    %c0_11 = arith.constant 0 : index
    %c0_12 = arith.constant 0 : index
    %21 = vector.load %arg5[%c0_10, %c0_11, %c0_12] : memref<7x16x16xf32, #tpu.memory_space<vmem>>, vector<1x16x16xf32>
    %22 = vector.shape_cast %21 : vector<1x16x16xf32> to vector<16x16xf32>
    %cst = arith.constant dense<0.000000e+00> : vector<24x16xf32>
    %23 = tpu.matmul %20, %22, %cst {dimension_numbers = #tpu.dot_dimension_numbers<[1], [0], [0], [1], [0, 0, 1, 1], [], []>, precision = #tpu.contract_precision<fp32>} : vector<24x16xf32>, vector<16x16xf32>, vector<24x16xf32> -> vector<24x16xf32>
    %24 = arith.addf %19, %23 : vector<24x16xf32>
    %25 = vector.extract_strided_slice %16 {offsets = [10, 0], sizes = [24, 16], strides = [1, 1]} : vector<48x16xf32> to vector<24x16xf32>
    %c1 = arith.constant 1 : index
    %c0_13 = arith.constant 0 : index
    %c0_14 = arith.constant 0 : index
    %26 = vector.load %arg5[%c1, %c0_13, %c0_14] : memref<7x16x16xf32, #tpu.memory_space<vmem>>, vector<1x16x16xf32>
    %27 = vector.shape_cast %26 : vector<1x16x16xf32> to vector<16x16xf32>
    %cst_15 = arith.constant dense<0.000000e+00> : vector<24x16xf32>
    %28 = tpu.matmul %25, %27, %cst_15 {dimension_numbers = #tpu.dot_dimension_numbers<[1], [0], [0], [1], [0, 0, 1, 1], [], []>, precision = #tpu.contract_precision<fp32>} : vector<24x16xf32>, vector<16x16xf32>, vector<24x16xf32> -> vector<24x16xf32>
    %29 = arith.addf %24, %28 : vector<24x16xf32>
    %30 = vector.extract_strided_slice %16 {offsets = [11, 0], sizes = [24, 16], strides = [1, 1]} : vector<48x16xf32> to vector<24x16xf32>
    %c2 = arith.constant 2 : index
    %c0_16 = arith.constant 0 : index
    %c0_17 = arith.constant 0 : index
    %31 = vector.load %arg5[%c2, %c0_16, %c0_17] : memref<7x16x16xf32, #tpu.memory_space<vmem>>, vector<1x16x16xf32>
    %32 = vector.shape_cast %31 : vector<1x16x16xf32> to vector<16x16xf32>
    %cst_18 = arith.constant dense<0.000000e+00> : vector<24x16xf32>
    %33 = tpu.matmul %30, %32, %cst_18 {dimension_numbers = #tpu.dot_dimension_numbers<[1], [0], [0], [1], [0, 0, 1, 1], [], []>, precision = #tpu.contract_precision<fp32>} : vector<24x16xf32>, vector<16x16xf32>, vector<24x16xf32> -> vector<24x16xf32>
    %34 = arith.addf %29, %33 : vector<24x16xf32>
    %35 = vector.extract_strided_slice %16 {offsets = [12, 0], sizes = [24, 16], strides = [1, 1]} : vector<48x16xf32> to vector<24x16xf32>
    %c3 = arith.constant 3 : index
    %c0_19 = arith.constant 0 : index
    %c0_20 = arith.constant 0 : index
    %36 = vector.load %arg5[%c3, %c0_19, %c0_20] : memref<7x16x16xf32, #tpu.memory_space<vmem>>, vector<1x16x16xf32>
    %37 = vector.shape_cast %36 : vector<1x16x16xf32> to vector<16x16xf32>
    %cst_21 = arith.constant dense<0.000000e+00> : vector<24x16xf32>
    %38 = tpu.matmul %35, %37, %cst_21 {dimension_numbers = #tpu.dot_dimension_numbers<[1], [0], [0], [1], [0, 0, 1, 1], [], []>, precision = #tpu.contract_precision<fp32>} : vector<24x16xf32>, vector<16x16xf32>, vector<24x16xf32> -> vector<24x16xf32>
    %39 = arith.addf %34, %38 : vector<24x16xf32>
    %40 = vector.extract_strided_slice %16 {offsets = [13, 0], sizes = [24, 16], strides = [1, 1]} : vector<48x16xf32> to vector<24x16xf32>
    %c4 = arith.constant 4 : index
    %c0_22 = arith.constant 0 : index
    %c0_23 = arith.constant 0 : index
    %41 = vector.load %arg5[%c4, %c0_22, %c0_23] : memref<7x16x16xf32, #tpu.memory_space<vmem>>, vector<1x16x16xf32>
    %42 = vector.shape_cast %41 : vector<1x16x16xf32> to vector<16x16xf32>
    %cst_24 = arith.constant dense<0.000000e+00> : vector<24x16xf32>
    %43 = tpu.matmul %40, %42, %cst_24 {dimension_numbers = #tpu.dot_dimension_numbers<[1], [0], [0], [1], [0, 0, 1, 1], [], []>, precision = #tpu.contract_precision<fp32>} : vector<24x16xf32>, vector<16x16xf32>, vector<24x16xf32> -> vector<24x16xf32>
    %44 = arith.addf %39, %43 : vector<24x16xf32>
    %45 = vector.extract_strided_slice %16 {offsets = [14, 0], sizes = [24, 16], strides = [1, 1]} : vector<48x16xf32> to vector<24x16xf32>
    %c5 = arith.constant 5 : index
    %c0_25 = arith.constant 0 : index
    %c0_26 = arith.constant 0 : index
    %46 = vector.load %arg5[%c5, %c0_25, %c0_26] : memref<7x16x16xf32, #tpu.memory_space<vmem>>, vector<1x16x16xf32>
    %47 = vector.shape_cast %46 : vector<1x16x16xf32> to vector<16x16xf32>
    %cst_27 = arith.constant dense<0.000000e+00> : vector<24x16xf32>
    %48 = tpu.matmul %45, %47, %cst_27 {dimension_numbers = #tpu.dot_dimension_numbers<[1], [0], [0], [1], [0, 0, 1, 1], [], []>, precision = #tpu.contract_precision<fp32>} : vector<24x16xf32>, vector<16x16xf32>, vector<24x16xf32> -> vector<24x16xf32>
    %49 = arith.addf %44, %48 : vector<24x16xf32>
    %50 = vector.extract_strided_slice %16 {offsets = [15, 0], sizes = [24, 16], strides = [1, 1]} : vector<48x16xf32> to vector<24x16xf32>
    %c6 = arith.constant 6 : index
    %c0_28 = arith.constant 0 : index
    %c0_29 = arith.constant 0 : index
    %51 = vector.load %arg5[%c6, %c0_28, %c0_29] : memref<7x16x16xf32, #tpu.memory_space<vmem>>, vector<1x16x16xf32>
    %52 = vector.shape_cast %51 : vector<1x16x16xf32> to vector<16x16xf32>
    %cst_30 = arith.constant dense<0.000000e+00> : vector<24x16xf32>
    %53 = tpu.matmul %50, %52, %cst_30 {dimension_numbers = #tpu.dot_dimension_numbers<[1], [0], [0], [1], [0, 0, 1, 1], [], []>, precision = #tpu.contract_precision<fp32>} : vector<24x16xf32>, vector<16x16xf32>, vector<24x16xf32> -> vector<24x16xf32>
    %54 = arith.addf %49, %53 : vector<24x16xf32>
    %cst_31 = arith.constant 0.000000e+00 : f32
    %55 = vector.broadcast %cst_31 : f32 to vector<24x16xf32>
    %56 = arith.maximumf %54, %55 : vector<24x16xf32>
    %57 = tpu.iota {dimensions = array<i32: 0>} : vector<24x1xi32>
    %c16_i32 = arith.constant 16 : i32
    %58 = arith.muli %arg1, %c16_i32 : i32
    %c4_i32 = arith.constant 4 : i32
    %59 = arith.subi %58, %c4_i32 : i32
    %60 = vector.broadcast %59 : i32 to vector<24x1xi32>
    %61 = arith.addi %57, %60 : vector<24x1xi32>
    %c0_i32_32 = arith.constant 0 : i32
    %62 = vector.broadcast %c0_i32_32 : i32 to vector<24x1xi32>
    %63 = arith.cmpi sge, %61, %62 : vector<24x1xi32>
    %c64_i32 = arith.constant 64 : i32
    %64 = vector.broadcast %c64_i32 : i32 to vector<24x1xi32>
    %65 = arith.cmpi slt, %61, %64 : vector<24x1xi32>
    %66 = arith.andi %63, %65 : vector<24x1xi1>
    %cst_33 = arith.constant 0.000000e+00 : f32
    %67 = vector.shape_cast %66 : vector<24x1xi1> to vector<24x1xi1>
    %68 = vector.broadcast %67 : vector<24x1xi1> to vector<24x16xi1>
    %69 = vector.broadcast %cst_33 : f32 to vector<24x16xf32>
    %70 = arith.select %68, %56, %69 : vector<24x16xi1>, vector<24x16xf32>
    %c0_34 = arith.constant 0 : index
    %c0_35 = arith.constant 0 : index
    %71 = vector.load %arg8[%c0_34, %c0_35] : memref<1x16xf32, #tpu.memory_space<vmem>>, vector<1x16xf32>
    %72 = vector.shape_cast %71 : vector<1x16xf32> to vector<1x16xf32>
    %73 = vector.broadcast %72 : vector<1x16xf32> to vector<16x16xf32>
    %74 = vector.extract_strided_slice %70 {offsets = [1, 0], sizes = [16, 16], strides = [1, 1]} : vector<24x16xf32> to vector<16x16xf32>
    %c0_36 = arith.constant 0 : index
    %c0_37 = arith.constant 0 : index
    %c0_38 = arith.constant 0 : index
    %75 = vector.load %arg7[%c0_36, %c0_37, %c0_38] : memref<7x16x16xf32, #tpu.memory_space<vmem>>, vector<1x16x16xf32>
    %76 = vector.shape_cast %75 : vector<1x16x16xf32> to vector<16x16xf32>
    %cst_39 = arith.constant dense<0.000000e+00> : vector<16x16xf32>
    %77 = tpu.matmul %74, %76, %cst_39 {dimension_numbers = #tpu.dot_dimension_numbers<[1], [0], [0], [1], [0, 0, 1, 1], [], []>, precision = #tpu.contract_precision<fp32>} : vector<16x16xf32>, vector<16x16xf32>, vector<16x16xf32> -> vector<16x16xf32>
    %78 = arith.addf %73, %77 : vector<16x16xf32>
    %79 = vector.extract_strided_slice %70 {offsets = [2, 0], sizes = [16, 16], strides = [1, 1]} : vector<24x16xf32> to vector<16x16xf32>
    %c1_40 = arith.constant 1 : index
    %c0_41 = arith.constant 0 : index
    %c0_42 = arith.constant 0 : index
    %80 = vector.load %arg7[%c1_40, %c0_41, %c0_42] : memref<7x16x16xf32, #tpu.memory_space<vmem>>, vector<1x16x16xf32>
    %81 = vector.shape_cast %80 : vector<1x16x16xf32> to vector<16x16xf32>
    %cst_43 = arith.constant dense<0.000000e+00> : vector<16x16xf32>
    %82 = tpu.matmul %79, %81, %cst_43 {dimension_numbers = #tpu.dot_dimension_numbers<[1], [0], [0], [1], [0, 0, 1, 1], [], []>, precision = #tpu.contract_precision<fp32>} : vector<16x16xf32>, vector<16x16xf32>, vector<16x16xf32> -> vector<16x16xf32>
    %83 = arith.addf %78, %82 : vector<16x16xf32>
    %84 = vector.extract_strided_slice %70 {offsets = [3, 0], sizes = [16, 16], strides = [1, 1]} : vector<24x16xf32> to vector<16x16xf32>
    %c2_44 = arith.constant 2 : index
    %c0_45 = arith.constant 0 : index
    %c0_46 = arith.constant 0 : index
    %85 = vector.load %arg7[%c2_44, %c0_45, %c0_46] : memref<7x16x16xf32, #tpu.memory_space<vmem>>, vector<1x16x16xf32>
    %86 = vector.shape_cast %85 : vector<1x16x16xf32> to vector<16x16xf32>
    %cst_47 = arith.constant dense<0.000000e+00> : vector<16x16xf32>
    %87 = tpu.matmul %84, %86, %cst_47 {dimension_numbers = #tpu.dot_dimension_numbers<[1], [0], [0], [1], [0, 0, 1, 1], [], []>, precision = #tpu.contract_precision<fp32>} : vector<16x16xf32>, vector<16x16xf32>, vector<16x16xf32> -> vector<16x16xf32>
    %88 = arith.addf %83, %87 : vector<16x16xf32>
    %89 = vector.extract_strided_slice %70 {offsets = [4, 0], sizes = [16, 16], strides = [1, 1]} : vector<24x16xf32> to vector<16x16xf32>
    %c3_48 = arith.constant 3 : index
    %c0_49 = arith.constant 0 : index
    %c0_50 = arith.constant 0 : index
    %90 = vector.load %arg7[%c3_48, %c0_49, %c0_50] : memref<7x16x16xf32, #tpu.memory_space<vmem>>, vector<1x16x16xf32>
    %91 = vector.shape_cast %90 : vector<1x16x16xf32> to vector<16x16xf32>
    %cst_51 = arith.constant dense<0.000000e+00> : vector<16x16xf32>
    %92 = tpu.matmul %89, %91, %cst_51 {dimension_numbers = #tpu.dot_dimension_numbers<[1], [0], [0], [1], [0, 0, 1, 1], [], []>, precision = #tpu.contract_precision<fp32>} : vector<16x16xf32>, vector<16x16xf32>, vector<16x16xf32> -> vector<16x16xf32>
    %93 = arith.addf %88, %92 : vector<16x16xf32>
    %94 = vector.extract_strided_slice %70 {offsets = [5, 0], sizes = [16, 16], strides = [1, 1]} : vector<24x16xf32> to vector<16x16xf32>
    %c4_52 = arith.constant 4 : index
    %c0_53 = arith.constant 0 : index
    %c0_54 = arith.constant 0 : index
    %95 = vector.load %arg7[%c4_52, %c0_53, %c0_54] : memref<7x16x16xf32, #tpu.memory_space<vmem>>, vector<1x16x16xf32>
    %96 = vector.shape_cast %95 : vector<1x16x16xf32> to vector<16x16xf32>
    %cst_55 = arith.constant dense<0.000000e+00> : vector<16x16xf32>
    %97 = tpu.matmul %94, %96, %cst_55 {dimension_numbers = #tpu.dot_dimension_numbers<[1], [0], [0], [1], [0, 0, 1, 1], [], []>, precision = #tpu.contract_precision<fp32>} : vector<16x16xf32>, vector<16x16xf32>, vector<16x16xf32> -> vector<16x16xf32>
    %98 = arith.addf %93, %97 : vector<16x16xf32>
    %99 = vector.extract_strided_slice %70 {offsets = [6, 0], sizes = [16, 16], strides = [1, 1]} : vector<24x16xf32> to vector<16x16xf32>
    %c5_56 = arith.constant 5 : index
    %c0_57 = arith.constant 0 : index
    %c0_58 = arith.constant 0 : index
    %100 = vector.load %arg7[%c5_56, %c0_57, %c0_58] : memref<7x16x16xf32, #tpu.memory_space<vmem>>, vector<1x16x16xf32>
    %101 = vector.shape_cast %100 : vector<1x16x16xf32> to vector<16x16xf32>
    %cst_59 = arith.constant dense<0.000000e+00> : vector<16x16xf32>
    %102 = tpu.matmul %99, %101, %cst_59 {dimension_numbers = #tpu.dot_dimension_numbers<[1], [0], [0], [1], [0, 0, 1, 1], [], []>, precision = #tpu.contract_precision<fp32>} : vector<16x16xf32>, vector<16x16xf32>, vector<16x16xf32> -> vector<16x16xf32>
    %103 = arith.addf %98, %102 : vector<16x16xf32>
    %104 = vector.extract_strided_slice %70 {offsets = [7, 0], sizes = [16, 16], strides = [1, 1]} : vector<24x16xf32> to vector<16x16xf32>
    %c6_60 = arith.constant 6 : index
    %c0_61 = arith.constant 0 : index
    %c0_62 = arith.constant 0 : index
    %105 = vector.load %arg7[%c6_60, %c0_61, %c0_62] : memref<7x16x16xf32, #tpu.memory_space<vmem>>, vector<1x16x16xf32>
    %106 = vector.shape_cast %105 : vector<1x16x16xf32> to vector<16x16xf32>
    %cst_63 = arith.constant dense<0.000000e+00> : vector<16x16xf32>
    %107 = tpu.matmul %104, %106, %cst_63 {dimension_numbers = #tpu.dot_dimension_numbers<[1], [0], [0], [1], [0, 0, 1, 1], [], []>, precision = #tpu.contract_precision<fp32>} : vector<16x16xf32>, vector<16x16xf32>, vector<16x16xf32> -> vector<16x16xf32>
    %108 = arith.addf %103, %107 : vector<16x16xf32>
    %109 = arith.addf %108, %1 : vector<16x16xf32>
    %cst_64 = arith.constant 0.000000e+00 : f32
    %110 = vector.broadcast %cst_64 : f32 to vector<16x16xf32>
    %111 = arith.maximumf %109, %110 : vector<16x16xf32>
    %c0_65 = arith.constant 0 : index
    %c0_66 = arith.constant 0 : index
    %c0_67 = arith.constant 0 : index
    %112 = vector.load %arg9[%c0_65, %c0_66, %c0_67] : memref<1x16x16xf32, #tpu.memory_space<vmem>>, vector<1x16x16xf32>
    %113 = vector.shape_cast %112 : vector<1x16x16xf32> to vector<16x16xf32>
    %114 = vector.shape_cast %111 : vector<16x16xf32> to vector<1x16x16xf32>
    tpu.vector_store %arg9[%c0_65, %c0_66, %c0_67], %114 {strides = array<i32>} : memref<1x16x16xf32, #tpu.memory_space<vmem>>, vector<1x16x16xf32>,
    return
  }
  func.func @transform_0(%arg0: i32, %arg1: i32) -> (i32, i32, i32) {
    %c0_i32 = arith.constant 0 : i32
    %c0_i32_0 = arith.constant 0 : i32
    return %arg0, %arg1, %c0_i32 : i32, i32, i32
  }
  func.func @transform_1(%arg0: i32, %arg1: i32) -> (i32, i32, i32) {
    %c1_i32 = arith.constant 1 : i32
    %0 = arith.muli %arg1, %c1_i32 : i32
    %c1_i32_0 = arith.constant 1 : i32
    %1 = arith.subi %0, %c1_i32_0 : i32
    %c0_i32 = arith.constant 0 : i32
    %2 = arith.maxsi %1, %c0_i32 : i32
    %c0_i32_1 = arith.constant 0 : i32
    %c0_i32_2 = arith.constant 0 : i32
    return %arg0, %2, %c0_i32_1 : i32, i32, i32
  }
  func.func @transform_2(%arg0: i32, %arg1: i32) -> (i32, i32, i32) {
    %c1_i32 = arith.constant 1 : i32
    %0 = arith.addi %arg1, %c1_i32 : i32
    %c1_i32_0 = arith.constant 1 : i32
    %1 = arith.muli %0, %c1_i32_0 : i32
    %c3_i32 = arith.constant 3 : i32
    %2 = arith.minsi %1, %c3_i32 : i32
    %c0_i32 = arith.constant 0 : i32
    %c0_i32_1 = arith.constant 0 : i32
    return %arg0, %2, %c0_i32 : i32, i32, i32
  }
  func.func @transform_3(%arg0: i32, %arg1: i32) -> (i32, i32, i32) {
    %c0_i32 = arith.constant 0 : i32
    %c0_i32_0 = arith.constant 0 : i32
    %c0_i32_1 = arith.constant 0 : i32
    %c0_i32_2 = arith.constant 0 : i32
    return %c0_i32, %c0_i32_0, %c0_i32_1 : i32, i32, i32
  }
  func.func @transform_4(%arg0: i32, %arg1: i32) -> (i32, i32) {
    %c0_i32 = arith.constant 0 : i32
    %c0_i32_0 = arith.constant 0 : i32
    %c0_i32_1 = arith.constant 0 : i32
    return %c0_i32, %c0_i32_0 : i32, i32
  }
  func.func @transform_5(%arg0: i32, %arg1: i32) -> (i32, i32, i32) {
    %c0_i32 = arith.constant 0 : i32
    %c0_i32_0 = arith.constant 0 : i32
    %c0_i32_1 = arith.constant 0 : i32
    %c0_i32_2 = arith.constant 0 : i32
    return %c0_i32, %c0_i32_0, %c0_i32_1 : i32, i32, i32
  }
  func.func @transform_6(%arg0: i32, %arg1: i32) -> (i32, i32) {
    %c0_i32 = arith.constant 0 : i32
    %c0_i32_0 = arith.constant 0 : i32
    %c0_i32_1 = arith.constant 0 : i32
    return %c0_i32, %c0_i32_0 : i32, i32
  }
  func.func @transform_7(%arg0: i32, %arg1: i32) -> (i32, i32, i32) {
    %c0_i32 = arith.constant 0 : i32
    %c0_i32_0 = arith.constant 0 : i32
    return %arg0, %arg1, %c0_i32 : i32, i32, i32
  }
}

</mosaic_0001>

<bundles_post_ra>
// kernel: tpu_custom_call.1
= control target key start
LH: loop header
LB: loop body
LE: loop exit
PB: predicated region body
PF: predicated region fallthrough
CT: control target
= control target key end

     0   :  { %s10218_s24 = smov 0   ;;  %s10220_s25 = smov 0   ;;  %s11318_s0 = inlined_call_operand.vmem [shape: f32[2,64,16], index: 0, kind: input, shape index: {}]   ;;  %s11319_s1 = inlined_call_operand.vmem [shape: f32[2,64,16], index: 1, kind: input, shape index: {}]   ;;  %s11320_s2 = inlined_call_operand.vmem [shape: f32[2,64,16], index: 2, kind: input, shape index: {}]   ;;  %s11321_s3 = inlined_call_operand.vmem [shape: f32[7,16,16], index: 3, kind: input, shape index: {}]   ;;  %s11322_s4 = inlined_call_operand.vmem [shape: f32[1,16], index: 4, kind: input, shape index: {}]   ;;  %s11323_s5 = inlined_call_operand.vmem [shape: f32[7,16,16], index: 5, kind: input, shape index: {}]   ;;  %s11324_s6 = inlined_call_operand.vmem [shape: f32[1,16], index: 6, kind: input, shape index: {}]   ;;  %s11325_s7 = inlined_call_operand.vmem [shape: f32[2,64,16], index: 7, kind: output, shape index: {}]  }
   0x1   :  { %s10222_s26 = smov 0   ;;  %s10224_s27 = smov 0  }
   0x2   :  { %s10226_s28 = smov 0  }
   0x3 LB: > { %s26_s29 = sadd.s32 1, %s10165_s26  ;;  %s29_s30 = sadd.s32 1, %s10169_s27  ;;  %s10173_s28 = sphi %s10226_s28, %s17_s28   ;;  %s10169_s27 = sphi %s10224_s27, %s11329_s27   ;;  %s10165_s26 = sphi %s10222_s26, %s11328_s26   ;;  %s10161_s25 = sphi %s10220_s25, %s11327_s25   ;;  %s10157_s24 = sphi %s10218_s24, %s11326_s24  }
   0x4   : > { %p27_p0 = scmp.ge.s32.totalorder %s26_s29, 4  ;;  %p8202_p1 = scmp.ge.s32.totalorder %s10173_s28, 1 }
   0x5   : > { %p316_p2 = scmp.lt.s32.totalorder %s10173_s28, 9 }
   0x6   : > { %s11331_s29 = smov (%p27_p0, %s26_s29), 0  ;;  %s11333_s30 = smov (!%p27_p0, %s29_s30), %s10169_s27 }
   0x7   : > { %p317_p3 = pnand %p8202_p1, %p316_p2  ;;  %p31_p4 = scmp.ge.s32.totalorder %s11333_s30, 2 }
   0x8   : > { %v10255_v0 = vld [vmem:[%s11321_s3 + $0x20] sm:$0xff] (!%p317_p3)  ;;  %v10260_v1 = vld [vmem:[%s11321_s3 + $0x28] sm:$0xff] (!%p317_p3)  ;;  %s8203_s12 = sshll.u32 (!%p317_p3), %s10157_s24, 1  ;;  %v10175_v2 = vmov (!%p317_p3), 0.0|0.0   ;;  %vm10176_vm0 = vmmov (!%p317_p3), 0   ;;  %v10177_v5 = vmov (!%p317_p3), 0.0  }
   0x9   : > { %s11335_s30 = smov (%p31_p4, %s11333_s30), 0  ;;  %320 = sbr.rel (%p317_p3) target bundleno = 1153 (0x481), region = 48 }
   0xa   : > { %9506 = vmatprep.subr.bf16.mxu0 (!%p317_p3), %v10175_v2  ;;  %v1605_v3 = vand.u32 (!%p317_p3), 4294901760, %v10255_v0  ;;  %v1608_v4 = vand.u32 (!%p317_p3), 4294901760, %v10260_v1  ;;  %8810 = vmatprep.mubr.msk.f32.mxu0 (!%p317_p3), %vm10176_vm0, %v10177_v5  ;;  %p381_p5 = scmp.lt.s32.totalorder (!%p317_p3), %s10161_s25, 1  ;;  %p383_p6 = scmp.lt.s32.totalorder (!%p317_p3), %s8203_s12, 7  ;;  %v453_v6 = vld [vmem:[%s11321_s3] sm:$0xff] (!%p317_p3)  ;;  %v454_v7 = vld [vmem:[%s11321_s3 + $0x8] sm:$0xff] (!%p317_p3) }
   0xb   : > { %s8206_s13 = sadd.s32 (!%p317_p3), 4294967295, %s10157_s24  ;;  %s406_s14 = sadd.s32 (!%p317_p3), 1, %s10157_s24  ;;  %9464 = vmatprep.subr.bf16.mxu1 (!%p317_p3), %v10175_v2  ;;  %8628 = vmatprep.mubr.msk.f32.mxu1 (!%p317_p3), %vm10176_vm0, %v10177_v5  ;;  %v475_v10 = vand.u32 (!%p317_p3), 4294901760, %v453_v6  ;;  %v478_v11 = vand.u32 (!%p317_p3), 4294901760, %v454_v7  ;;  %vm459_vm1 = vcmask (!%p317_p3), 1046528   ;;  %vm467_vm2 = vcmask (!%p317_p3), 130048  }
   0xc   : > { %v10283_v8 = vsub.f32 (!%p317_p3), %v10255_v0, %v1605_v3  ;;  %v10288_v9 = vsub.f32 (!%p317_p3), %v10260_v1, %v1608_v4  ;;  %p391_p7 = scmp.gt.s32.totalorder (!%p317_p3), %s8206_s13, 0  ;;  %p407_p8 = scmp.lt.s32.totalorder (!%p317_p3), %s406_s14, 3  ;;  %vm1590_vm3 = vcmask (!%p317_p3), 1044480   ;;  %v10374_v52 = vpack.c.bf16 (!%p317_p3), %v1608_v4, %v1605_v3 }
   0xd   : > { %v10293_v13 = vpack.c.bf16 (!%p317_p3), %v478_v11, %v475_v10  ;;  %p435_p9 = scmp.gt.s32.totalorder (!%p317_p3), %s10157_s24, 0  ;;  %p441_p12 = scmp.lt.s32.totalorder (!%p317_p3), %s10157_s24, 3  ;;  %v10325_v19 = vsub.f32 (!%p317_p3), %v453_v6, %v475_v10  ;;  %v10327_v20 = vsub.f32 (!%p317_p3), %v454_v7, %v478_v11  ;;  %vm2155_vm4 = vcmask (!%p317_p3), 1043456  }
   0xe   : > { %v9507_v12 = vpack.c.bf16 (!%p317_p3), %v10288_v9, %v10283_v8  ;;  %vm1025_vm5 = vcmask (!%p317_p3), 1045504   ;;  %vm2720_vm6 = vcmask (!%p317_p3), 1042432   ;;  %vm3285_vm7 = vcmask (!%p317_p3), 1041408   ;;  %s8229_s18 = sshll.u32 (!%p317_p3), %s10157_s24, 4 }
   0xf   : > { %9466 = vmatpush3.bf16.msra.mxu1 (!%p317_p3), %v10293_v13  ;;  %v574_v27 = vand.u32 (!%p317_p3), 4294901760, %v10325_v19  ;;  %v581_v28 = vand.u32 (!%p317_p3), 4294901760, %v10327_v20  ;;  %vm3850_vm8 = vcmask (!%p317_p3), 1040384  }
  0x10   : > { %s11337_s25 = smov (!%p381_p5, %s10161_s25), 1  ;;  %s11339_s12 = smov (!%p383_p6, %s8203_s12), 7  ;;  %9508 = vmatpush3.bf16.msra.mxu0 %v9507_v12  ;;  %9467 = vmatprep.subr.bf16.mxu1 %v10175_v2  ;;  %v1704_v12 = vand.u32 4294901760, %v10283_v8 }
  0x11   : > { %s8204_s19 = sshll.u32 %s11337_s25, 3  ;;  %9509 = vmatprep.subr.bf16.mxu0 %v10175_v2  ;;  %s11341_s13 = smov (!%p391_p7, %s8206_s13), 0  ;;  %v575_v39 = vsub.f32 %v10325_v19, %v574_v27  ;;  %v582_v43 = vsub.f32 %v10327_v20, %v581_v28 }
  0x12   : > { %s386_s20 = sadd.s32 %s8204_s19, %s11339_s12  ;;  %s11343_s14 = smov (!%p407_p8, %s406_s14), 3 }
  0x13   : > { %s10296_s21 = sshll.u32 %s386_s20, 3  ;;  %s8207_s22 = sshll.u32 %s11341_s13, 1  ;;  %v576_v59 = vand.u32 4294901760, %v575_v39  ;;  %v583_v60 = vand.u32 4294901760, %v582_v43 }
  0x14   : > { %p396_p10 = scmp.lt.s32.totalorder %s8207_s22, 7  ;;  %s8210_s23 = sshll.u32 %s11343_s14, 1 }
  0x15   : > { %s10305_s9 = scalar_lea.vmem %s11318_s0, %s10296_s21  ;;  %p412_p11 = scmp.lt.s32.totalorder %s8210_s23, 7  ;;  %v9468_v7 = vpack.c.bf16 %v583_v60, %v576_v59 }
  0x16   : > { %s11345_s22 = smov (!%p396_p10, %s8207_s22), 7  ;;  %v10308_v14 = vld [vmem:[%s10305_s9 + $0x8] sm:$0xff]  ;;  %v10312_v16 = vld [vmem:[%s10305_s9] sm:$0xff] }
  0x17   : > { %s11347_s23 = smov (!%p412_p11, %s8210_s23), 7  ;;  %v463_v15 = vrot.slane %v10308_v14, 1  ;;  %s399_s10 = sadd.s32 %s8204_s19, %s11345_s22  ;;  %v461_v17 = vrot.slane %v10312_v16, 1  ;;  %v1594_v21 = vrot.slane %v10308_v14, 3  ;;  %v1592_v25 = vrot.slane %v10312_v16, 3 }
  0x18   : > { %s8209_s11 = sshll.u32 %s399_s10, 3  ;;  %s415_s12 = sadd.s32 %s8204_s19, %s11347_s23 }
  0x19   : > { %s8212_s13 = sshll.u32 %s415_s12, 3  ;;  %s401_s16 = scalar_lea.vmem %s11319_s1, %s8209_s11  ;;  %v464_v18 = vsel %vm459_vm1, %v461_v17, %v463_v15  ;;  %v1595_v30 = vsel %vm1590_vm3, %v1592_v25, %v1594_v21 }
  0x1a   : > { %s417_s20 = scalar_lea.vmem %s11320_s2, %s8212_s13  ;;  %v434_v22 = vld [vmem:[%s401_s16 + $0x8] sm:$0xff]  ;;  %v470_v23 = vsel %vm467_vm2, %v464_v18, 0  ;;  %v1600_v36 = vsel %vm467_vm2, %v1595_v30, 0  ;;  %v2157_v30 = vrot.slane %v10312_v16, 4 }
  0x1b   : > { %s436_s22 = scalar_select %p435_p9, 1, 0  ;;  %v440_v24 = vld [vmem:[%s417_s20] sm:$0xff]  ;;  %v10339_v32 = vand.u32 4294901760, %v470_v23  ;;  %v10365_v49 = vand.u32 4294901760, %v1600_v36 }
  0x1c   : > { %s442_s19 = scalar_select %p441_p12, 1, 0 }
  0x1d   : > { %s437_s23 = scvt.s32.f32 %s436_s22  ;;  %v10354_v42 = vsub.f32 %v470_v23, %v10339_v32  ;;  %v1682_v62 = vsub.f32 %v1600_v36, %v10365_v49  ;;  %v8222_v36 = vld [vmem:[%s11321_s3 + $0x38] sm:$0xff]  ;;  %s8230_s20 = sadd.s32 4294967292, %s8229_s18 }
  0x1e   : > { %s443_s25 = scvt.s32.f32 %s442_s19  ;;  %v2173_v43 = vand.u32 4294901760, %v8222_v36  ;;  %s430_s18 = scalar_lea.vmem %s11325_s7, %s10296_s21 }
  0x1f   : > { %v438_v26 = vstv %s437_s23  ;;  %v553_v57 = vand.u32 4294901760, %v10354_v42  ;;  %v1683_v23 = vand.u32 4294901760, %v1682_v62 }
  0x20   : > { %v10336_v29 = vmul.f32 %v438_v26, %v434_v22  ;;  %v444_v31 = vstv %s443_s25 }
  0x21   : > { %v10341_v33 = vmul.f32 %v444_v31, %v440_v24  ;;  %v554_v4 = vsub.f32 %v10354_v42, %v553_v57  ;;  %v9471_v24 = vpack.c.bf16 %v10327_v20, %v10325_v19 }
  0x22   : > { %v1591_v34 = vrot.slane %v10336_v29, 3  ;;  %v460_v35 = vrot.slane %v10336_v29, 1  ;;  %v2156_v26 = vrot.slane %v10336_v29, 4 }
  0x23   : > { %v1596_v37 = vrot.slane %v10341_v33, 3  ;;  %v465_v38 = vrot.slane %v10341_v33, 1 }
  0x24   : > { %v1593_v40 = vsel %vm1590_vm3, %v1591_v34, %v1592_v25  ;;  %v462_v41 = vsel %vm459_vm1, %v460_v35, %v461_v17  ;;  %v555_v17 = vand.u32 4294901760, %v554_v4  ;;  %v2158_v31 = vsel %vm2155_vm4, %v2156_v26, %v2157_v30  ;;  %v8221_v35 = vld [vmem:[%s11321_s3 + $0x30] sm:$0xff] }
  0x25   : > { %v1598_v44 = vsel %vm467_vm2, %v1593_v40, 0  ;;  %v1597_v45 = vsel %vm1590_vm3, %v1594_v21, %v1596_v37  ;;  %v468_v46 = vsel %vm467_vm2, %v462_v41, 0  ;;  %v466_v47 = vsel %vm459_vm1, %v463_v15, %v465_v38 }
  0x26   : > { %v10363_v48 = vand.u32 4294901760, %v1598_v44  ;;  %v10367_v50 = vand.u32 4294901760, %v468_v46  ;;  %v472_v51 = vsel %vm467_vm2, %v466_v47, 0  ;;  %v1602_v53 = vsel %vm467_vm2, %v1597_v45, 0 }
  0x27   : > { %v10377_v54 = vand.u32 4294901760, %v472_v51  ;;  %v10388_v63 = vand.u32 4294901760, %v1602_v53  ;;  %v1711_v15 = vand.u32 4294901760, %v10288_v9  ;;  %v2159_v34 = vrot.slane %v10308_v14, 4 }
  0x28   : > { %v1672_v55 = vsub.f32 %v1598_v44, %v10363_v48  ;;  %v10381_v56 = vsub.f32 %v468_v46, %v10367_v50  ;;  %v2163_v37 = vsel %vm467_vm2, %v2158_v31, 0  ;;  %v10456_v38 = vsub.f32 %v1682_v62, %v1683_v23 }
  0x29   : > { %v10385_v58 = vsub.f32 %v472_v51, %v10377_v54  ;;  %v10405_v10 = vsub.f32 %v1602_v53, %v10388_v63  ;;  %v9513_v21 = vpack.c.bf16 %v1711_v15, %v1704_v12  ;;  %v2160_v39 = vsel %vm2155_vm4, %v2157_v30, %v2159_v34 }
  0x2a   : > { %v1673_v61 = vand.u32 4294901760, %v1672_v55  ;;  %8811 = vmatmul.mubr.f32.vlgmr.msra.gmra.mrb[0].mxu0 %v1672_v55  ;;  %v543_v0 = vand.u32 4294901760, %v10381_v56  ;;  %v2161_v40 = vrot.slane %v10341_v33, 4  ;;  %v2170_v41 = vand.u32 4294901760, %v8221_v35 }
  0x2b   : > { %9511 = vmatpush3.bf16.msra.mxu0 %v10374_v52  ;;  %8813 = vmatprep.mubr.msk.f32.mxu0 %vm10176_vm0, %v10177_v5  ;;  %v563_v6 = vand.u32 4294901760, %v10385_v58  ;;  %v1693_v25 = vand.u32 4294901760, %v10405_v10  ;;  %v10465_v44 = vand.u32 4294901760, %v2163_v37  ;;  %v1705_v45 = vsub.f32 %v10283_v8, %v1704_v12 }
  0x2c   : > { %v10394_v1 = vsub.f32 %v1672_v55, %v1673_v61  ;;  %v544_v3 = vsub.f32 %v10381_v56, %v543_v0  ;;  %9512 = vmatprep.subr.bf16.mxu0 %v10175_v2  ;;  %v1712_v46 = vsub.f32 %v10288_v9, %v1711_v15  ;;  %v10471_v47 = vsub.f32 %v8221_v35, %v2170_v41 }
  0x2d   : > { %v564_v18 = vsub.f32 %v10385_v58, %v563_v6  ;;  %v10473_v51 = vsub.f32 %v8222_v36, %v2173_v43  ;;  %v2165_v53 = vsel %vm467_vm2, %v2160_v39, 0  ;;  %v10477_v55 = vsub.f32 %v10405_v10, %v1693_v25 }
  0x2e   : > { %8814 = vmatmul.mubr.f32.gmra.mrb[2].mxu0 %v1682_v62  ;;  %v545_v11 = vand.u32 4294901760, %v544_v3  ;;  %v2162_v59 = vsel %vm2155_vm4, %v2159_v34, %v2161_v40  ;;  %v1706_v60 = vand.u32 4294901760, %v1705_v45  ;;  %v1713_v8 = vand.u32 4294901760, %v1712_v46 }
  0x2f   : > { %8816 = vmatprep.mubr.msk.f32.mxu0 %vm10176_vm0, %v10177_v5  ;;  %v565_v22 = vand.u32 4294901760, %v564_v18  ;;  %v10486_v9 = vsub.f32 %v2163_v37, %v10465_v44  ;;  %v10495_v3 = vpack.c.bf16 %v2173_v43, %v2170_v41  ;;  %v2269_v4 = vand.u32 4294901760, %v10471_v47 }
  0x30   : > { %8629 = vmatmul.mubr.f32.vlgmr.msra.gmra.mrb[0].mxu1 %v545_v11  ;;  %v10491_v62 = vpack.c.bf16 %v1713_v8, %v1706_v60  ;;  %v1026_v30 = vrot.slane %v10336_v29, 2  ;;  %v1027_v31 = vrot.slane %v10312_v16, 2  ;;  %v1029_v34 = vrot.slane %v10308_v14, 2 }
  0x31   : > { %8631 = vmatprep.mubr.msk.f32.mxu1 %vm10176_vm0, %v10177_v5  ;;  %9469 = vmatpush3.bf16.msra.mxu1 %v9468_v7  ;;  %v2276_v7 = vand.u32 4294901760, %v10473_v51  ;;  %v2238_v11 = vand.u32 4294901760, %v10486_v9  ;;  %v1031_v37 = vrot.slane %v10341_v33, 2  ;;  %v9525_v39 = vpack.c.bf16 %v10473_v51, %v10471_v47 }
  0x32   : > { %8817 = vmatmul.mubr.f32.gmra.mrb[4].mxu0 %v10405_v10  ;;  %9470 = vmatprep.subr.bf16.mxu1 %v10175_v2  ;;  %v2167_v10 = vsel %vm467_vm2, %v2162_v59, 0  ;;  %v1030_v36 = vsel %vm1025_vm5, %v1027_v31, %v1029_v34 }
  0x33   : > { %8823 = vmatprep.mubr.msk.f32.mxu0 %vm10176_vm0, %v10177_v5  ;;  %v10508_v15 = vand.u32 4294901760, %v2167_v10  ;;  %v2277_v18 = vsub.f32 %v10473_v51, %v2276_v7  ;;  %v1035_v46 = vsel %vm467_vm2, %v1030_v36, 0  ;;  %v2721_v51 = vrot.slane %v10336_v29, 5 }
  0x34   : > { %8632 = vmatmul.mubr.f32.gmra.mrb[2].mxu1 %v555_v17  ;;  %v2270_v17 = vsub.f32 %v10471_v47, %v2269_v4  ;;  %v10606_v60 = vand.u32 4294901760, %v1035_v46 }
  0x35   : > { %8634 = vmatprep.mubr.msk.f32.mxu1 %vm10176_vm0, %v10177_v5  ;;  %v2278_v26 = vand.u32 4294901760, %v2277_v18 }
  0x36   : > { %8824 = vmatmul.mubr.f32.vlgmr.msra.gmra.mrb[0].mxu0 %v1673_v61  ;;  %v10488_v61 = vand.u32 4294901760, %v2165_v53 }
  0x37   : > { %9514 = vmatpush3.bf16.msra.mxu0 %v9513_v21  ;;  %8826 = vmatprep.mubr.msk.f32.mxu0 %vm10176_vm0, %v10177_v5  ;;  %v9477_v21 = vpack.c.bf16 %v581_v28, %v574_v27 }
  0x38   : > { %8635 = vmatmul.mubr.f32.gmra.mrb[4].mxu1 %v565_v22  ;;  %9515 = vmatprep.subr.bf16.mxu0 %v10175_v2  ;;  %v10506_v12 = vsub.f32 %v2165_v53, %v10488_v61  ;;  %v2239_v22 = vsub.f32 %v10486_v9, %v2238_v11  ;;  %v1032_v53 = vsel %vm1025_vm5, %v1029_v34, %v1031_v37 }
  0x39   : > { %8641 = vmatprep.mubr.msk.f32.mxu1 %vm10176_vm0, %v10177_v5  ;;  %v9531_v34 = vpack.c.bf16 %v2276_v7, %v2269_v4  ;;  %v2724_v7 = vrot.slane %v10308_v14, 5 }
  0x3a   : > { %8827 = vmatmul.mubr.f32.gmra.mrb[2].mxu0 %v1683_v23  ;;  %v2248_v23 = vand.u32 4294901760, %v10506_v12  ;;  %v2240_v19 = vand.u32 4294901760, %v2239_v22  ;;  %v10621_v22 = vsub.f32 %v1035_v46, %v10606_v60 }
  0x3b   : > { %8829 = vmatprep.mubr.msk.f32.mxu0 %vm10176_vm0, %v10177_v5 }
  0x3c   : > { %8642 = vmatmul.mubr.f32.vlgmr.msra.gmra.mrb[0].mxu1 %v10367_v50  ;;  %v2249_v20 = vsub.f32 %v10506_v12, %v2248_v23 }
  0x3d   : > { %8644 = vmatprep.mubr.msk.f32.mxu1 %vm10176_vm0, %v10177_v5  ;;  %9472 = vmatpush3.bf16.msra.mxu1 %v9471_v24  ;;  %v10533_v24 = vsub.f32 %v2167_v10, %v10508_v15  ;;  %v1037_v10 = vsel %vm467_vm2, %v1032_v53, 0 }
  0x3e   : > { %8830 = vmatmul.mubr.f32.gmra.mrb[4].mxu0 %v1693_v25  ;;  %9473 = vmatprep.subr.bf16.mxu1 %v10175_v2  ;;  %v2271_v25 = vand.u32 4294901760, %v2270_v17 }
  0x3f   : > { %8836 = vmatprep.mubr.msk.f32.mxu0 %vm10176_vm0, %v10177_v5  ;;  %v2258_v27 = vand.u32 4294901760, %v10533_v24 }
  0x40   : > { %8645 = vmatmul.mubr.f32.gmra.mrb[2].mxu1 %v10339_v32  ;;  %v9522_v28 = vpack.c.bf16 %v2278_v26, %v2271_v25  ;;  %v10623_v25 = vand.u32 4294901760, %v1037_v10 }
  0x41   : > { %8647 = vmatprep.mubr.msk.f32.mxu1 %vm10176_vm0, %v10177_v5 }
  0x42   : > { %8837 = vmatmul.mubr.f32.vlgmr.msra.gmra.mrb[0].mxu0 %v10363_v48 }
  0x43   : > { %9517 = vmatpush3.bf16.msra.mxu0 %v10374_v52  ;;  %8839 = vmatprep.mubr.msk.f32.mxu0 %vm10176_vm0, %v10177_v5 }
  0x44   : > { %8648 = vmatmul.mubr.f32.gmra.mrb[4].mxu1 %v10377_v54  ;;  %9518 = vmatprep.subr.bf16.mxu0 %v10175_v2 }
  0x45   : > { %8654 = vmatprep.mubr.msk.f32.mxu1 %vm10176_vm0, %v10177_v5 }
  0x46   : > { %8840 = vmatmul.mubr.f32.gmra.mrb[2].mxu0 %v10365_v49 }
  0x47   : > { %8842 = vmatprep.mubr.msk.f32.mxu0 %vm10176_vm0, %v10177_v5 }
  0x48   : > { %8655 = vmatmul.mubr.f32.vlgmr.msra.gmra.mrb[0].mxu1 %v10381_v56  ;;  %v2250_v56 = vand.u32 4294901760, %v2249_v20  ;;  %v1118_v20 = vand.u32 4294901760, %v10621_v22 }
  0x49   : > { %8657 = vmatprep.mubr.msk.f32.mxu1 %vm10176_vm0, %v10177_v5  ;;  %9475 = vmatpush3.bf16.msra.mxu1 %v10293_v13 }
  0x4a   : > { %8843 = vmatmul.mubr.f32.gmra.mrb[4].mxu0 %v10388_v63  ;;  %9476 = vmatprep.subr.bf16.mxu1 %v10175_v2 }
  0x4b   : > { %8849 = vmatprep.mubr.msk.f32.mxu0 %vm10176_vm0, %v10177_v5 }
  0x4c   : > { %8658 = vmatmul.mubr.f32.gmra.mrb[2].mxu1 %v10354_v42 }
  0x4d   : > { %8660 = vmatprep.mubr.msk.f32.mxu1 %vm10176_vm0, %v10177_v5 }
  0x4e   : > { %8850 = vmatmul.mubr.f32.vlgmr.msra.gmra.mrb[0].mxu0 %v10363_v48 }
  0x4f   : > { %9520 = vmatpush3.bf16.msra.mxu0 %v10495_v3  ;;  %8852 = vmatprep.mubr.msk.f32.mxu0 %vm10176_vm0, %v10177_v5 }
  0x50   : > { %8661 = vmatmul.mubr.f32.gmra.mrb[4].mxu1 %v10385_v58  ;;  %9521 = vmatprep.subr.bf16.mxu0 %v10175_v2  ;;  %v8217_v58 = vld [vmem:[%s11321_s3 + $0x10] sm:$0xff] }
  0x51   : > { %8667 = vmatprep.mubr.msk.f32.mxu1 %vm10176_vm0, %v10177_v5  ;;  %v1040_v40 = vand.u32 4294901760, %v8217_v58 }
  0x52   : > { %8853 = vmatmul.mubr.f32.gmra.mrb[2].mxu0 %v10365_v49 }
  0x53   : > { %8855 = vmatprep.mubr.msk.f32.mxu0 %vm10176_vm0, %v10177_v5  ;;  %v10592_v43 = vsub.f32 %v8217_v58, %v1040_v40 }
  0x54   : > { %8668 = vmatmul.mubr.f32.vlgmr.msra.gmra.mrb[0].mxu1 %v543_v0  ;;  %v2259_v0 = vsub.f32 %v10533_v24, %v2258_v27 }
  0x55   : > { %8670 = vmatprep.mubr.msk.f32.mxu1 %vm10176_vm0, %v10177_v5  ;;  %9478 = vmatpush3.bf16.msra.mxu1 %v9477_v21  ;;  %v1139_v17 = vand.u32 4294901760, %v10592_v43 }
  0x56   : > { %8856 = vmatmul.mubr.f32.gmra.mrb[4].mxu0 %v10388_v63  ;;  %9479 = vmatprep.subr.bf16.mxu1 %v10175_v2  ;;  %v2260_v42 = vand.u32 4294901760, %v2259_v0 }
  0x57   : > { %8862 = vmatprep.mubr.msk.f32.mxu0 %vm10176_vm0, %v10177_v5  ;;  %v1140_v26 = vsub.f32 %v10592_v43, %v1139_v17 }
  0x58   : > { %8671 = vmatmul.mubr.f32.gmra.mrb[2].mxu1 %v553_v57  ;;  %v1028_v57 = vsel %vm1025_vm5, %v1026_v30, %v1027_v31  ;;  %v1119_v30 = vsub.f32 %v10621_v22, %v1118_v20 }
  0x59   : > { %8673 = vmatprep.mubr.msk.f32.mxu1 %vm10176_vm0, %v10177_v5  ;;  %v1033_v35 = vsel %vm467_vm2, %v1028_v57, 0 }
  0x5a   : > { %8863 = vmatmul.mubr.f32.vlgmr.msra.gmra.mrb[0].mxu0 %v2240_v19 }
  0x5b   : > { %9523 = vmatpush3.bf16.msra.mxu0 %v9522_v28  ;;  %8865 = vmatprep.mubr.msk.f32.mxu0 %vm10176_vm0, %v10177_v5  ;;  %v10644_v28 = vsub.f32 %v1037_v10, %v10623_v25 }
  0x5c   : > { %8674 = vmatmul.mubr.f32.gmra.mrb[4].mxu1 %v563_v6  ;;  %9524 = vmatprep.subr.bf16.mxu0 %v10175_v2  ;;  %v8218_v6 = vld [vmem:[%s11321_s3 + $0x18] sm:$0xff] }
  0x5d   : > { %8680 = vmatprep.mubr.msk.f32.mxu1 %vm10176_vm0, %v10177_v5  ;;  %v1043_v41 = vand.u32 4294901760, %v8218_v6  ;;  %v1128_v31 = vand.u32 4294901760, %v10644_v28 }
  0x5e   : > { %8866 = vmatmul.mubr.f32.gmra.mrb[2].mxu0 %v2250_v56  ;;  %v1141_v56 = vand.u32 4294901760, %v1140_v26 }
  0x5f   : > { %8868 = vmatprep.mubr.msk.f32.mxu0 %vm10176_vm0, %v10177_v5  ;;  %v10594_v45 = vsub.f32 %v8218_v6, %v1043_v41  ;;  %v10610_v8 = vpack.c.bf16 %v1043_v41, %v1040_v40  ;;  %v1129_v57 = vsub.f32 %v10644_v28, %v1128_v31 }
  0x60   : > { %8681 = vmatmul.mubr.f32.vlgmr.msra.gmra.mrb[0].mxu1 %v10367_v50 }
  0x61   : > { %8683 = vmatprep.mubr.msk.f32.mxu1 %vm10176_vm0, %v10177_v5  ;;  %9481 = vmatpush3.bf16.msra.mxu1 %v10293_v13  ;;  %v10588_v13 = vand.u32 4294901760, %v1033_v35  ;;  %v1146_v18 = vand.u32 4294901760, %v10594_v45  ;;  %v1130_v58 = vand.u32 4294901760, %v1129_v57  ;;  %v9489_v47 = vpack.c.bf16 %v10594_v45, %v10592_v43 }
  0x62   : > { %8869 = vmatmul.mubr.f32.gmra.mrb[4].mxu0 %v2260_v42  ;;  %9482 = vmatprep.subr.bf16.mxu1 %v10175_v2 }
  0x63   : > { %8875 = vmatprep.mubr.msk.f32.mxu0 %vm10176_vm0, %v10177_v5  ;;  %v10604_v59 = vsub.f32 %v1033_v35, %v10588_v13 }
  0x64   : > { %8684 = vmatmul.mubr.f32.gmra.mrb[2].mxu1 %v10339_v32 }
  0x65   : > { %8686 = vmatprep.mubr.msk.f32.mxu1 %vm10176_vm0, %v10177_v5  ;;  %v1108_v21 = vand.u32 4294901760, %v10604_v59 }
  0x66   : > { %8876 = vmatmul.mubr.f32.vlgmr.msra.gmra.mrb[0].mxu0 %v10465_v44 }
  0x67   : > { %9526 = vmatpush3.bf16.msra.mxu0 %v9525_v39  ;;  %8878 = vmatprep.mubr.msk.f32.mxu0 %vm10176_vm0, %v10177_v5  ;;  %v1109_v19 = vsub.f32 %v10604_v59, %v1108_v21 }
  0x68   : > { %8687 = vmatmul.mubr.f32.gmra.mrb[4].mxu1 %v10377_v54  ;;  %9527 = vmatprep.subr.bf16.mxu0 %v10175_v2 }
  0x69   : > { %8693 = vmatprep.mubr.msk.f32.mxu1 %vm10176_vm0, %v10177_v5 }
  0x6a   : > { %8879 = vmatmul.mubr.f32.gmra.mrb[2].mxu0 %v10488_v61 }
  0x6b   : > { %8881 = vmatprep.mubr.msk.f32.mxu0 %vm10176_vm0, %v10177_v5 }
  0x6c   : > { %8694 = vmatmul.mubr.f32.vlgmr.msra.gmra.mrb[0].mxu1 %v10367_v50  ;;  %v1147_v50 = vsub.f32 %v10594_v45, %v1146_v18 }
  0x6d   : > { %8696 = vmatprep.mubr.msk.f32.mxu1 %vm10176_vm0, %v10177_v5  ;;  %9484 = vmatpush3.bf16.msra.mxu1 %v10610_v8 }
  0x6e   : > { %8882 = vmatmul.mubr.f32.gmra.mrb[4].mxu0 %v10508_v15  ;;  %9485 = vmatprep.subr.bf16.mxu1 %v10175_v2  ;;  %v1148_v0 = vand.u32 4294901760, %v1147_v50 }
  0x6f   : > { %8888 = vmatprep.mubr.msk.f32.mxu0 %vm10176_vm0, %v10177_v5 }
  0x70   : > { %8697 = vmatmul.mubr.f32.gmra.mrb[2].mxu1 %v10339_v32  ;;  %v1110_v32 = vand.u32 4294901760, %v1109_v19  ;;  %v9486_v42 = vpack.c.bf16 %v1148_v0, %v1141_v56 }
  0x71   : > { %8699 = vmatprep.mubr.msk.f32.mxu1 %vm10176_vm0, %v10177_v5 }
  0x72   : > { %8889 = vmatmul.mubr.f32.vlgmr.msra.gmra.mrb[0].mxu0 %v10486_v9  ;;  %v2722_v9 = vrot.slane %v10312_v16, 5 }
  0x73   : > { %9529 = vmatpush3.bf16.msra.mxu0 %v10495_v3  ;;  %8891 = vmatprep.mubr.msk.f32.mxu0 %vm10176_vm0, %v10177_v5 }
  0x74   : > { %8700 = vmatmul.mubr.f32.gmra.mrb[4].mxu1 %v10377_v54  ;;  %9530 = vmatprep.subr.bf16.mxu0 %v10175_v2  ;;  %v1120_v54 = vand.u32 4294901760, %v1119_v30  ;;  %v2723_v4 = vsel %vm2720_vm6, %v2721_v51, %v2722_v9  ;;  %v9495_v30 = vpack.c.bf16 %v1146_v18, %v1139_v17 }
  0x75   : > { %8706 = vmatprep.mubr.msk.f32.mxu1 %vm10176_vm0, %v10177_v5 }
  0x76   : > { %8892 = vmatmul.mubr.f32.gmra.mrb[2].mxu0 %v10506_v12  ;;  %v8224_v12 = vld [vmem:[%s11321_s3 + $0x48] sm:$0xff] }
  0x77   : > { %8894 = vmatprep.mubr.msk.f32.mxu0 %vm10176_vm0, %v10177_v5  ;;  %v2738_v35 = vand.u32 4294901760, %v8224_v12 }
  0x78   : > { %8707 = vmatmul.mubr.f32.vlgmr.msra.gmra.mrb[0].mxu1 %v1110_v32 }
  0x79   : > { %8709 = vmatprep.mubr.msk.f32.mxu1 %vm10176_vm0, %v10177_v5  ;;  %9487 = vmatpush3.bf16.msra.mxu1 %v9486_v42  ;;  %v10730_v37 = vsub.f32 %v8224_v12, %v2738_v35 }
  0x7a   : > { %8895 = vmatmul.mubr.f32.gmra.mrb[4].mxu0 %v10533_v24  ;;  %9488 = vmatprep.subr.bf16.mxu1 %v10175_v2  ;;  %v2725_v24 = vsel %vm2720_vm6, %v2722_v9, %v2724_v7 }
  0x7b   : > { %8901 = vmatprep.mubr.msk.f32.mxu0 %vm10176_vm0, %v10177_v5  ;;  %v2730_v39 = vsel %vm467_vm2, %v2725_v24, 0  ;;  %v2841_v26 = vand.u32 4294901760, %v10730_v37 }
  0x7c   : > { %8710 = vmatmul.mubr.f32.gmra.mrb[2].mxu1 %v1120_v54  ;;  %v10742_v46 = vand.u32 4294901760, %v2730_v39 }
  0x7d   : > { %8712 = vmatprep.mubr.msk.f32.mxu1 %vm10176_vm0, %v10177_v5 }
  0x7e   : > { %8902 = vmatmul.mubr.f32.vlgmr.msra.gmra.mrb[0].mxu0 %v2238_v11  ;;  %v8223_v11 = vld [vmem:[%s11321_s3 + $0x40] sm:$0xff]  ;;  %v10758_v56 = vsub.f32 %v2730_v39, %v10742_v46 }
  0x7f   : > { %9532 = vmatpush3.bf16.msra.mxu0 %v9531_v34  ;;  %8904 = vmatprep.mubr.msk.f32.mxu0 %vm10176_vm0, %v10177_v5  ;;  %v2735_v6 = vand.u32 4294901760, %v8223_v11 }
  0x80   : > { %8713 = vmatmul.mubr.f32.gmra.mrb[4].mxu1 %v1130_v58  ;;  %9533 = vmatprep.subr.bf16.mxu0 %v10175_v2  ;;  %v2813_v54 = vand.u32 4294901760, %v10758_v56 }
  0x81   : > { %8719 = vmatprep.mubr.msk.f32.mxu1 %vm10176_vm0, %v10177_v5  ;;  %v10728_v36 = vsub.f32 %v8223_v11, %v2735_v6  ;;  %v10747_v53 = vpack.c.bf16 %v2738_v35, %v2735_v6 }
  0x82   : > { %8905 = vmatmul.mubr.f32.gmra.mrb[2].mxu0 %v2248_v23  ;;  %v2728_v23 = vsel %vm467_vm2, %v2723_v4, 0  ;;  %v2814_v43 = vsub.f32 %v10758_v56, %v2813_v54 }
  0x83   : > { %8907 = vmatprep.mubr.msk.f32.mxu0 %vm10176_vm0, %v10177_v5  ;;  %v2834_v10 = vand.u32 4294901760, %v10728_v36 }
  0x84   : > { %8720 = vmatmul.mubr.f32.vlgmr.msra.gmra.mrb[0].mxu1 %v10588_v13 }
  0x85   : > { %8722 = vmatprep.mubr.msk.f32.mxu1 %vm10176_vm0, %v10177_v5  ;;  %9490 = vmatpush3.bf16.msra.mxu1 %v9489_v47  ;;  %v2835_v32 = vsub.f32 %v10728_v36, %v2834_v10 }
  0x86   : > { %8908 = vmatmul.mubr.f32.gmra.mrb[4].mxu0 %v2258_v27  ;;  %9491 = vmatprep.subr.bf16.mxu1 %v10175_v2  ;;  %v2726_v27 = vrot.slane %v10341_v33, 5 }
  0x87   : > { %8914 = vmatprep.mubr.msk.f32.mxu0 %vm10176_vm0, %v10177_v5  ;;  %v2836_v34 = vand.u32 4294901760, %v2835_v32 }
  0x88   : > { %8723 = vmatmul.mubr.f32.gmra.mrb[2].mxu1 %v10606_v60  ;;  %v2727_v40 = vsel %vm2720_vm6, %v2724_v7, %v2726_v27 }
  0x89   : > { %8725 = vmatprep.mubr.msk.f32.mxu1 %vm10176_vm0, %v10177_v5  ;;  %v2732_v50 = vsel %vm467_vm2, %v2727_v40, 0 }
  0x8a   : > { %8915 = vmatmul.mubr.f32.vlgmr.msra.gmra.mrb[0].mxu0 %v10465_v44  ;;  %v10760_v0 = vand.u32 4294901760, %v2732_v50 }
  0x8b   : > { %9535 = vmatpush3.bf16.msra.mxu0 %v10495_v3  ;;  %8917 = vmatprep.mubr.msk.f32.mxu0 %vm10176_vm0, %v10177_v5  ;;  %v10724_v3 = vand.u32 4294901760, %v2728_v23 }
  0x8c   : > { %8726 = vmatmul.mubr.f32.gmra.mrb[4].mxu1 %v10623_v25  ;;  %9536 = vmatprep.subr.bf16.mxu0 %v10175_v2  ;;  %v10785_v57 = vsub.f32 %v2732_v50, %v10760_v0 }
  0x8d   : > { %8732 = vmatprep.mubr.msk.f32.mxu1 %vm10176_vm0, %v10177_v5  ;;  %v10740_v41 = vsub.f32 %v2728_v23, %v10724_v3 }
  0x8e   : > { %8918 = vmatmul.mubr.f32.gmra.mrb[2].mxu0 %v10488_v61  ;;  %v2823_v45 = vand.u32 4294901760, %v10785_v57 }
  0x8f   : > { %8920 = vmatprep.mubr.msk.f32.mxu0 %vm10176_vm0, %v10177_v5  ;;  %v2803_v19 = vand.u32 4294901760, %v10740_v41 }
  0x90   : > { %8733 = vmatmul.mubr.f32.vlgmr.msra.gmra.mrb[0].mxu1 %v10604_v59  ;;  %v2824_v17 = vsub.f32 %v10785_v57, %v2823_v45 }
  0x91   : > { %8735 = vmatprep.mubr.msk.f32.mxu1 %vm10176_vm0, %v10177_v5  ;;  %9493 = vmatpush3.bf16.msra.mxu1 %v10610_v8  ;;  %v2804_v42 = vsub.f32 %v10740_v41, %v2803_v19 }
  0x92   : > { %8921 = vmatmul.mubr.f32.gmra.mrb[4].mxu0 %v10508_v15  ;;  %9494 = vmatprep.subr.bf16.mxu1 %v10175_v2  ;;  %v2825_v18 = vand.u32 4294901760, %v2824_v17 }
  0x93   : > { %8927 = vmatprep.mubr.msk.f32.mxu0 %vm10176_vm0, %v10177_v5 }
  0x94   : > { %8736 = vmatmul.mubr.f32.gmra.mrb[2].mxu1 %v10621_v22  ;;  %v3291_v22 = vrot.slane %v10341_v33, 6 }
  0x95   : > { %8738 = vmatprep.mubr.msk.f32.mxu1 %vm10176_vm0, %v10177_v5 }
  0x96   : > { %8928 = vmatmul.mubr.f32.vlgmr.msra.gmra.mrb[0].mxu0 %v10465_v44  ;;  %v2842_v44 = vsub.f32 %v10730_v37, %v2841_v26 }
  0x97   : > { %9538 = vmatpush3.bf16.msra.mxu0 %v10747_v53  ;;  %8930 = vmatprep.mubr.msk.f32.mxu0 %vm10176_vm0, %v10177_v5 }
  0x98   : > { %8739 = vmatmul.mubr.f32.gmra.mrb[4].mxu1 %v10644_v28  ;;  %9539 = vmatprep.subr.bf16.mxu0 %v10175_v2  ;;  %v2843_v58 = vand.u32 4294901760, %v2842_v44  ;;  %v3851_v44 = vrot.slane %v10336_v29, 7 }
  0x99   : > { %8745 = vmatprep.mubr.msk.f32.mxu1 %vm10176_vm0, %v10177_v5 }
  0x9a   : > { %8931 = vmatmul.mubr.f32.gmra.mrb[2].mxu0 %v10488_v61  ;;  %v2805_v61 = vand.u32 4294901760, %v2804_v42  ;;  %v9540_v59 = vpack.c.bf16 %v2843_v58, %v2836_v34  ;;  %v8227_v58 = vld [vmem:[%s11321_s3 + $0x60] sm:$0xff] }
  0x9b   : > { %8933 = vmatprep.mubr.msk.f32.mxu0 %vm10176_vm0, %v10177_v5 }
  0x9c   : > { %8746 = vmatmul.mubr.f32.vlgmr.msra.gmra.mrb[0].mxu1 %v1108_v21  ;;  %v9543_v21 = vpack.c.bf16 %v10730_v37, %v10728_v36 }
  0x9d   : > { %8748 = vmatprep.mubr.msk.f32.mxu1 %vm10176_vm0, %v10177_v5  ;;  %9496 = vmatpush3.bf16.msra.mxu1 %v9495_v30  ;;  %v10131_v30 = vld [vmem:[%s10305_s9] sm:$0xff] }
  0x9e   : > { %8934 = vmatmul.mubr.f32.gmra.mrb[4].mxu0 %v10508_v15  ;;  %9497 = vmatprep.subr.bf16.mxu1 %v10175_v2  ;;  %v2815_v15 = vand.u32 4294901760, %v2814_v43  ;;  %v3852_v42 = vrot.slane %v10131_v30, 7  ;;  %v4415_v30 = vlaneseq }
  0x9f   : > { %8940 = vmatprep.mubr.msk.f32.mxu0 %vm10176_vm0, %v10177_v5 }
  0xa0   : > { %8749 = vmatmul.mubr.f32.gmra.mrb[2].mxu1 %v1118_v20 }
  0xa1   : > { %8751 = vmatprep.mubr.msk.f32.mxu1 %vm10176_vm0, %v10177_v5 }
  0xa2   : > { %8941 = vmatmul.mubr.f32.vlgmr.msra.gmra.mrb[0].mxu0 %v2805_v61 }
  0xa3   : > { %9541 = vmatpush3.bf16.msra.mxu0 %v9540_v59  ;;  %8943 = vmatprep.mubr.msk.f32.mxu0 %vm10176_vm0, %v10177_v5  ;;  %v3865_v59 = vand.u32 4294901760, %v8227_v58 }
  0xa4   : > { %8752 = vmatmul.mubr.f32.gmra.mrb[4].mxu1 %v1128_v31  ;;  %9542 = vmatprep.subr.bf16.mxu0 %v10175_v2 }
  0xa5   : > { %8758 = vmatprep.mubr.msk.f32.mxu1 %vm10176_vm0, %v10177_v5 }
  0xa6   : > { %8944 = vmatmul.mubr.f32.gmra.mrb[2].mxu0 %v2815_v15 }
  0xa7   : > { %8946 = vmatprep.mubr.msk.f32.mxu0 %vm10176_vm0, %v10177_v5 }
  0xa8   : > { %8759 = vmatmul.mubr.f32.vlgmr.msra.gmra.mrb[0].mxu1 %v10588_v13 }
  0xa9   : > { %8761 = vmatprep.mubr.msk.f32.mxu1 %vm10176_vm0, %v10177_v5  ;;  %9499 = vmatpush3.bf16.msra.mxu1 %v10610_v8  ;;  %v8226_v8 = vld [vmem:[%s11321_s3 + $0x58] sm:$0xff] }
  0xaa   : > { %8947 = vmatmul.mubr.f32.gmra.mrb[4].mxu0 %v2825_v18  ;;  %9500 = vmatprep.subr.bf16.mxu1 %v10175_v2  ;;  %v3303_v20 = vand.u32 4294901760, %v8226_v8  ;;  %v11007_v18 = vsub.f32 %v8227_v58, %v3865_v59 }
  0xab   : > { %8953 = vmatprep.mubr.msk.f32.mxu0 %vm10176_vm0, %v10177_v5 }
  0xac   : > { %8762 = vmatmul.mubr.f32.gmra.mrb[2].mxu1 %v10606_v60  ;;  %v3405_v47 = vsub.f32 %v8226_v8, %v3303_v20 }
  0xad   : > { %8764 = vmatprep.mubr.msk.f32.mxu1 %vm10176_vm0, %v10177_v5 }
  0xae   : > { %8954 = vmatmul.mubr.f32.vlgmr.msra.gmra.mrb[0].mxu0 %v10724_v3  ;;  %v3406_v12 = vand.u32 4294901760, %v3405_v47 }
  0xaf   : > { %9544 = vmatpush3.bf16.msra.mxu0 %v9543_v21  ;;  %8956 = vmatprep.mubr.msk.f32.mxu0 %vm10176_vm0, %v10177_v5 }
  0xb0   : > { %8765 = vmatmul.mubr.f32.gmra.mrb[4].mxu1 %v10623_v25  ;;  %9545 = vmatprep.subr.bf16.mxu0 %v10175_v2  ;;  %v3407_v36 = vsub.f32 %v3405_v47, %v3406_v12 }
  0xb1   : > { %8771 = vmatprep.mubr.msk.f32.mxu1 %vm10176_vm0, %v10177_v5 }
  0xb2   : > { %8957 = vmatmul.mubr.f32.gmra.mrb[2].mxu0 %v10742_v46 }
  0xb3   : > { %8959 = vmatprep.mubr.msk.f32.mxu0 %vm10176_vm0, %v10177_v5 }
  0xb4   : > { %8772 = vmatmul.mubr.f32.vlgmr.msra.gmra.mrb[0].mxu1 %v10588_v13  ;;  %v1685_v13 = vand.u32 4294901760, %v10456_v38  ;;  %v3286_v38 = vrot.slane %v10336_v29, 6  ;;  %v8228_v29 = vld [vmem:[%s11321_s3 + $0x68] sm:$0xff] }
  0xb5   : > { %8774 = vmatprep.mubr.msk.f32.mxu1 %vm10176_vm0, %v10177_v5  ;;  %9502 = vmatpush3.bf16.msra.mxu1 %v10374_v52  ;;  %v1675_v52 = vand.u32 4294901760, %v10394_v1  ;;  %v9549_v1 = vpack.c.bf16 %v2841_v26, %v2834_v10  ;;  %v3868_v15 = vand.u32 4294901760, %v8228_v29 }
  0xb6   : > { %8960 = vmatmul.mubr.f32.gmra.mrb[4].mxu0 %v10760_v0  ;;  %9503 = vmatprep.subr.bf16.mxu1 %v10175_v2 }
  0xb7   : > { %8966 = vmatprep.mubr.msk.f32.mxu0 %vm10176_vm0, %v10177_v5  ;;  %v3970_v21 = vsub.f32 %v8228_v29, %v3868_v15 }
  0xb8   : > { %8775 = vmatmul.mubr.f32.gmra.mrb[2].mxu1 %v10606_v60  ;;  %v1695_v60 = vand.u32 4294901760, %v10477_v55  ;;  %v3287_v55 = vrot.slane %v10312_v16, 6  ;;  %v8225_v16 = vld [vmem:[%s11321_s3 + $0x50] sm:$0xff] }
  0xb9   : > { %8777 = vmatprep.mubr.msk.f32.mxu1 %vm10176_vm0, %v10177_v5 }
  0xba   : > { %8967 = vmatmul.mubr.f32.vlgmr.msra.gmra.mrb[0].mxu0 %v10740_v41  ;;  %v3408_v41 = vand.u32 4294901760, %v3407_v36 }
  0xbb   : > { %9547 = vmatpush3.bf16.msra.mxu0 %v10747_v53  ;;  %8969 = vmatprep.mubr.msk.f32.mxu0 %vm10176_vm0, %v10177_v5 }
  0xbc   : > { %8778 = vmatmul.mubr.f32.gmra.mrb[4].mxu1 %v10623_v25  ;;  %9548 = vmatprep.subr.bf16.mxu0 %v10175_v2  ;;  %v3300_v25 = vand.u32 4294901760, %v8225_v16 }
  0xbd   : > { %8784 = vmatprep.mubr.msk.f32.mxu1 %vm10176_vm0, %v10177_v5 }
  0xbe   : > { %8970 = vmatmul.mubr.f32.gmra.mrb[2].mxu0 %v10758_v56  ;;  %v10921_v31 = vsub.f32 %v8225_v16, %v3300_v25  ;;  %v10931_v7 = vpack.c.bf16 %v3303_v20, %v3300_v25 }
  0xbf   : > { %8972 = vmatprep.mubr.msk.f32.mxu0 %vm10176_vm0, %v10177_v5 }
  0xc0   : > { %8785 = vmatmul.mubr.f32.vlgmr.msra.gmra.mrb[0].mxu1 %v1675_v52  ;;  %v3399_v11 = vand.u32 4294901760, %v10921_v31 }
  0xc1   : > { %8787 = vmatprep.mubr.msk.f32.mxu1 %vm10176_vm0, %v10177_v5  ;;  %9505 = vmatpush3.bf16.msra.mxu1 %v10491_v62  ;;  %v3288_v62 = vsel %vm3285_vm7, %v3286_v38, %v3287_v55  ;;  %v3964_v38 = vand.u32 4294901760, %v11007_v18 }
  0xc2   : > { %8973 = vmatmul.mubr.f32.gmra.mrb[4].mxu0 %v10785_v57  ;;  %v3400_v35 = vsub.f32 %v10921_v31, %v3399_v11  ;;  %v9567_v32 = vpack.c.bf16 %v3406_v12, %v3399_v11  ;;  %v10132_v57 = vld [vmem:[%s10305_s9 + $0x8] sm:$0xff]  ;;  %v9579_v12 = vpack.c.bf16 %v3970_v21, %v11007_v18 }
  0xc3   : > { %8979 = vmatprep.mubr.msk.f32.mxu0 %vm10176_vm0, %v10177_v5  ;;  %v3854_v34 = vrot.slane %v10132_v57, 7  ;;  %v8216_v57 = vld [vmem:[%s11322_s4] ss:$0 sm:$0xff] }
  0xc4   : > { %8788 = vmatmul.mubr.f32.gmra.mrb[2].mxu1 %v1685_v13  ;;  %v3401_v40 = vand.u32 4294901760, %v3400_v35 }
  0xc5   : > { %8790 = vmatprep.mubr.msk.f32.mxu1 %vm10176_vm0, %v10177_v5  ;;  %v3855_v43 = vsel %vm3850_vm8, %v3852_v42, %v3854_v34 }
  0xc6   : > { %8980 = vmatmul.mubr.f32.vlgmr.msra.gmra.mrb[0].mxu0 %v2803_v19  ;;  %v9558_v50 = vpack.c.bf16 %v3408_v41, %v3401_v40  ;;  %v3860_v52 = vsel %vm467_vm2, %v3855_v43, 0 }
  0xc7   : > { %9550 = vmatpush3.bf16.msra.mxu0 %v9549_v1  ;;  %8982 = vmatprep.mubr.msk.f32.mxu0 %vm10176_vm0, %v10177_v5  ;;  %v11013_v1 = vand.u32 4294901760, %v3860_v52 }
  0xc8   : > { %8791 = vmatmul.mubr.f32.gmra.mrb[4].mxu1 %v1695_v60  ;;  %9551 = vmatprep.subr.bf16.mxu0 %v10175_v2  ;;  %v11017_v60 = vpack.c.bf16 %v3868_v15, %v3865_v59 }
  0xc9   : > { %8797 = vmatprep.mubr.msk.f32.mxu1 %vm10176_vm0, %v10177_v5  ;;  %v3942_v16 = vsub.f32 %v3860_v52, %v11013_v1 }
  0xca   : > { %8983 = vmatmul.mubr.f32.gmra.mrb[2].mxu0 %v2813_v54  ;;  %v3853_v54 = vsel %vm3850_vm8, %v3851_v44, %v3852_v42  ;;  %v4416_v42 = vshrl.u32 %v4415_v30, 7 }
  0xcb   : > { %8985 = vmatprep.mubr.msk.f32.mxu0 %vm10176_vm0, %v10177_v5  ;;  %v3858_v61 = vsel %vm467_vm2, %v3853_v54, 0  ;;  %v3943_v25 = vand.u32 4294901760, %v3942_v16  ;;  %v4421_v54 = vstv %s8230_s20 }
  0xcc   : > { %8798 = vmatmul.mubr.f32.vlgmr.msra.gmra.mrb[0].mxu1 %v10363_v48  ;;  %v3289_v48 = vrot.slane %v10308_v14, 6  ;;  %v3293_v14 = vsel %vm467_vm2, %v3288_v62, 0  ;;  %v11003_v17 = vand.u32 4294901760, %v3858_v61  ;;  %v4417_v58 = vadd.s32 8, %v4416_v42 }
  0xcd   : > { %8800 = vmatprep.mubr.msk.f32.mxu1 %vm10176_vm0, %v10177_v5  ;;  %v10917_v28 = vand.u32 4294901760, %v3293_v14  ;;  %v4418_v43 = vadd.s32 16, %v4416_v42 }
  0xce   : > { %8986 = vmatmul.mubr.f32.gmra.mrb[4].mxu0 %v2823_v45  ;;  %v3292_v51 = vsel %vm3285_vm7, %v3289_v48, %v3291_v22  ;;  %v3856_v45 = vrot.slane %v10341_v33, 7  ;;  %v3932_v33 = vsub.f32 %v3858_v61, %v11003_v17  ;;  %v4423_v61 = vadd.s32 %v4421_v54, %v4417_v58 }
  0xcf   : > { %8992 = vmatprep.mubr.msk.f32.mxu0 %vm10176_vm0, %v10177_v5  ;;  %v3367_v9 = vsub.f32 %v3293_v14, %v10917_v28  ;;  %v3297_v23 = vsel %vm467_vm2, %v3292_v51, 0  ;;  %v3965_v14 = vsub.f32 %v11007_v18, %v3964_v38 }
  0xd0   : > { %8801 = vmatmul.mubr.f32.gmra.mrb[2].mxu1 %v10365_v49  ;;  %v3290_v49 = vsel %vm3285_vm7, %v3287_v55, %v3289_v48  ;;  %v10937_v6 = vand.u32 4294901760, %v3297_v23  ;;  %v3857_v13 = vsel %vm3850_vm8, %v3854_v34, %v3856_v45  ;;  %v3971_v55 = vand.u32 4294901760, %v3970_v21 }
  0xd1   : > { %8803 = vmatprep.mubr.msk.f32.mxu1 %vm10176_vm0, %v10177_v5  ;;  %v3368_v24 = vand.u32 4294901760, %v3367_v9  ;;  %v3862_v62 = vsel %vm467_vm2, %v3857_v13, 0  ;;  %v3933_v48 = vand.u32 4294901760, %v3932_v33  ;;  %v4422_v34 = vadd.s32 %v4421_v54, %v4416_v42 }
  0xd2   : > { %8993 = vmatmul.mubr.f32.vlgmr.msra.gmra.mrb[0].mxu0 %v10724_v3  ;;  %v11023_v8 = vand.u32 4294901760, %v3862_v62  ;;  %vm4426_vm12 = vcmp.ge.s32.totalorder %v4423_v61, 0  ;;  %vm4429_vm13 = vcmp.lt.s32.totalorder %v4423_v61, 64 }
  0xd3   : > { %9553 = vmatpush3.bf16.msra.mxu0 %v10747_v53  ;;  %8995 = vmatprep.mubr.msk.f32.mxu0 %vm10176_vm0, %v10177_v5  ;;  %v3369_v37 = vsub.f32 %v3367_v9, %v3368_v24  ;;  %v3934_v22 = vsub.f32 %v3932_v33, %v3933_v48  ;;  %vm4425_vm9 = vcmp.ge.s32.totalorder %v4422_v34, 0  ;;  %vm4428_vm10 = vcmp.lt.s32.totalorder %v4422_v34, 64  ;;  %vm4432_vm14 = vmand %vm4426_vm12, %vm4429_vm13 }
  0xd4   : > { %8804 = vmatmul.mubr.f32.gmra.mrb[4].mxu1 %v10388_v63  ;;  %9554 = vmatprep.subr.bf16.mxu0 %v10175_v2  ;;  %v3295_v63 = vsel %vm467_vm2, %v3290_v49, 0  ;;  %v3972_v49 = vsub.f32 %v3970_v21, %v3971_v55  ;;  %v3952_v20 = vsub.f32 %v3862_v62, %v11023_v8  ;;  %vm4431_vm11 = vmand %vm4425_vm9, %vm4428_vm10  ;;  %v4424_v21 = vadd.s32 %v4421_v54, %v4418_v43 }
  0xd5   : > { %v10927_v4 = vand.u32 4294901760, %v3295_v63  ;;  %v3370_v53 = vand.u32 4294901760, %v3369_v37  ;;  %v4450_v37 = vld [vmem:[%s11323_s5] sm:$0xff] }
  0xd6   : > { %8996 = vmatmul.mubr.f32.gmra.mrb[2].mxu0 %v10742_v46  ;;  %v3953_v51 = vand.u32 4294901760, %v3952_v20  ;;  %vm4427_vm15 = vcmp.ge.s32.totalorder %v4424_v21, 0 }
  0xd7   : > { %8998 = vmatprep.mubr.msk.f32.mxu0 %vm10176_vm0, %v10177_v5  ;;  %v3377_v27 = vsub.f32 %v3295_v63, %v10927_v4  ;;  %v3944_v63 = vsub.f32 %v3942_v16, %v3943_v25 }
  0xd9   : > { %v3378_v39 = vand.u32 4294901760, %v3377_v27 }
  0xda   : > { %8999 = vmatmul.mubr.f32.gmra.mrb[4].mxu0 %v10760_v0 }
  0xdb   : > { %9005 = vmatprep.mubr.msk.f32.mxu0 %vm10176_vm0, %v10177_v5  ;;  %v3379_v10 = vsub.f32 %v3377_v27, %v3378_v39 }
  0xde   : > { %9006 = vmatmul.mubr.f32.vlgmr.msra.gmra.mrb[0].mxu0 %v10724_v3  ;;  %v3387_v3 = vsub.f32 %v3297_v23, %v10937_v6  ;;  %v9585_v23 = vpack.c.bf16 %v3971_v55, %v3964_v38 }
  0xdf   : > { %9556 = vmatpush3.bf16.msra.mxu0 %v10931_v7  ;;  %9008 = vmatprep.mubr.msk.f32.mxu0 %vm10176_vm0, %v10177_v5 }
  0xe0   : > { %9557 = vmatprep.subr.bf16.mxu0 %v10175_v2  ;;  %v3388_v26 = vand.u32 4294901760, %v3387_v3 }
  0xe2   : > { %9009 = vmatmul.mubr.f32.gmra.mrb[2].mxu0 %v10742_v46  ;;  %v3380_v46 = vand.u32 4294901760, %v3379_v10  ;;  %v3389_v19 = vsub.f32 %v3387_v3, %v3388_v26 }
  0xe3   : > { %9011 = vmatprep.mubr.msk.f32.mxu0 %vm10176_vm0, %v10177_v5 }
  0xe4   : > { %v3390_v56 = vand.u32 4294901760, %v3389_v19 }
  0xe6   : > { %9012 = vmatmul.mubr.f32.gmra.mrb[4].mxu0 %v10760_v0  ;;  %v9561_v0 = vpack.c.bf16 %v3405_v47, %v10921_v31  ;;  %v3973_v31 = vand.u32 4294901760, %v3972_v49  ;;  %v3935_v47 = vand.u32 4294901760, %v3934_v22 }
  0xe7   : > { %9018 = vmatprep.mubr.msk.f32.mxu0 %vm10176_vm0, %v10177_v5 }
  0xea   : > { %9019 = vmatmul.mubr.f32.vlgmr.msra.gmra.mrb[0].mxu0 %v3370_v53 }
  0xeb   : > { %9559 = vmatpush3.bf16.msra.mxu0 %v9558_v50  ;;  %9021 = vmatprep.mubr.msk.f32.mxu0 %vm10176_vm0, %v10177_v5 }
  0xec   : > { %9560 = vmatprep.subr.bf16.mxu0 %v10175_v2 }
  0xee   : > { %9022 = vmatmul.mubr.f32.gmra.mrb[2].mxu0 %v3380_v46 }
  0xef   : > { %9024 = vmatprep.mubr.msk.f32.mxu0 %vm10176_vm0, %v10177_v5 }
  0xf2   : > { %9025 = vmatmul.mubr.f32.gmra.mrb[4].mxu0 %v3390_v56 }
  0xf3   : > { %9031 = vmatprep.mubr.msk.f32.mxu0 %vm10176_vm0, %v10177_v5 }
  0xf6   : > { %9032 = vmatmul.mubr.f32.vlgmr.msra.gmra.mrb[0].mxu0 %v10917_v28 }
  0xf7   : > { %9562 = vmatpush3.bf16.msra.mxu0 %v9561_v0  ;;  %9034 = vmatprep.mubr.msk.f32.mxu0 %vm10176_vm0, %v10177_v5 }
  0xf8   : > { %9563 = vmatprep.subr.bf16.mxu0 %v10175_v2 }
  0xfa   : > { %9035 = vmatmul.mubr.f32.gmra.mrb[2].mxu0 %v10927_v4 }
  0xfb   : > { %9037 = vmatprep.mubr.msk.f32.mxu0 %vm10176_vm0, %v10177_v5 }
  0xfe   : > { %9038 = vmatmul.mubr.f32.gmra.mrb[4].mxu0 %v10937_v6 }
  0xff   : > { %9044 = vmatprep.mubr.msk.f32.mxu0 %vm10176_vm0, %v10177_v5 }
 0x102   : > { %9045 = vmatmul.mubr.f32.vlgmr.msra.gmra.mrb[0].mxu0 %v3367_v9 }
 0x103   : > { %9565 = vmatpush3.bf16.msra.mxu0 %v10931_v7  ;;  %9047 = vmatprep.mubr.msk.f32.mxu0 %vm10176_vm0, %v10177_v5 }
 0x104   : > { %9566 = vmatprep.subr.bf16.mxu0 %v10175_v2 }
 0x106   : > { %9048 = vmatmul.mubr.f32.gmra.mrb[2].mxu0 %v3377_v27 }
 0x107   : > { %9050 = vmatprep.mubr.msk.f32.mxu0 %vm10176_vm0, %v10177_v5 }
 0x10a   : > { %9051 = vmatmul.mubr.f32.gmra.mrb[4].mxu0 %v3387_v3  ;;  %v4465_v3 = vand.u32 4294901760, %v4450_v37 }
 0x10b   : > { %9057 = vmatprep.mubr.msk.f32.mxu0 %vm10176_vm0, %v10177_v5 }
 0x10c   : > { %v4553_v41 = vsub.f32 %v4450_v37, %v4465_v3 }
 0x10e   : > { %9058 = vmatmul.mubr.f32.vlgmr.msra.gmra.mrb[0].mxu0 %v3368_v24  ;;  %v4554_v10 = vand.u32 4294901760, %v4553_v41 }
 0x10f   : > { %9568 = vmatpush3.bf16.msra.mxu0 %v9567_v32  ;;  %9060 = vmatprep.mubr.msk.f32.mxu0 %vm10176_vm0, %v10177_v5 }
 0x110   : > { %9569 = vmatprep.subr.bf16.mxu0 %v10175_v2  ;;  %v4555_v50 = vsub.f32 %v4553_v41, %v4554_v10 }
 0x112   : > { %9061 = vmatmul.mubr.f32.gmra.mrb[2].mxu0 %v3378_v39  ;;  %v4451_v39 = vld [vmem:[%s11323_s5 + $0x8] sm:$0xff]  ;;  %v4556_v19 = vand.u32 4294901760, %v4555_v50 }
 0x113   : > { %9063 = vmatprep.mubr.msk.f32.mxu0 %vm10176_vm0, %v10177_v5  ;;  %v4468_v40 = vand.u32 4294901760, %v4451_v39 }
 0x115   : > { %v4560_v53 = vsub.f32 %v4451_v39, %v4468_v40 }
 0x116   : > { %9064 = vmatmul.mubr.f32.gmra.mrb[4].mxu0 %v3388_v26 }
 0x117   : > { %9070 = vmatprep.mubr.msk.f32.mxu0 %vm10176_vm0, %v10177_v5  ;;  %v4561_v26 = vand.u32 4294901760, %v4560_v53  ;;  %v11097_v0 = vpack.c.bf16 %v4560_v53, %v4553_v41 }
 0x119   : > { %v4562_v46 = vsub.f32 %v4560_v53, %v4561_v26  ;;  %v11102_v44 = vpack.c.bf16 %v4561_v26, %v4554_v10 }
 0x11a   : > { %9071 = vmatmul.mubr.f32.vlgmr.msra.gmra.mrb[0].mxu0 %v10917_v28 }
 0x11b   : > { %9571 = vmatpush3.bf16.msra.mxu0 %v10931_v7  ;;  %9073 = vmatprep.mubr.msk.f32.mxu0 %vm10176_vm0, %v10177_v5  ;;  %v3954_v7 = vsub.f32 %v3952_v20, %v3953_v51  ;;  %v4563_v56 = vand.u32 4294901760, %v4562_v46 }
 0x11c   : > { %9572 = vmatprep.subr.bf16.mxu0 %v10175_v2 }
 0x11d   : > { %v3955_v11 = vand.u32 4294901760, %v3954_v7  ;;  %v11099_v32 = vpack.c.bf16 %v4563_v56, %v4556_v19 }
 0x11e   : > { %9074 = vmatmul.mubr.f32.gmra.mrb[2].mxu0 %v10927_v4 }
 0x11f   : > { %9076 = vmatprep.mubr.msk.f32.mxu0 %vm10176_vm0, %v10177_v5 }
 0x122   : > { %9077 = vmatmul.mubr.f32.gmra.mrb[4].mxu0 %v10937_v6 }
 0x123   : > { %9083 = vmatprep.mubr.msk.f32.mxu0 %vm10176_vm0, %v10177_v5 }
 0x126   : > { %9084 = vmatmul.mubr.f32.vlgmr.msra.gmra.mrb[0].mxu0 %v10917_v28  ;;  %v3966_v28 = vand.u32 4294901760, %v3965_v14 }
 0x127   : > { %9574 = vmatpush3.bf16.msra.mxu0 %v11017_v60  ;;  %9086 = vmatprep.mubr.msk.f32.mxu0 %vm10176_vm0, %v10177_v5 }
 0x128   : > { %9575 = vmatprep.subr.bf16.mxu0 %v10175_v2  ;;  %v9576_v9 = vpack.c.bf16 %v3973_v31, %v3966_v28 }
 0x12a   : > { %9087 = vmatmul.mubr.f32.gmra.mrb[2].mxu0 %v10927_v4  ;;  %v3945_v4 = vand.u32 4294901760, %v3944_v63 }
 0x12b   : > { %9089 = vmatprep.mubr.msk.f32.mxu0 %vm10176_vm0, %v10177_v5 }
 0x12e   : > { %9090 = vmatmul.mubr.f32.gmra.mrb[4].mxu0 %v10937_v6 }
 0x12f   : > { %9096 = vmatprep.mubr.msk.f32.mxu0 %vm10176_vm0, %v10177_v5 }
 0x132   : > { %9097 = vmatmul.mubr.f32.vlgmr.msra.gmra.mrb[0].mxu0 %v3935_v47 }
 0x133   : > { %9577 = vmatpush3.bf16.msra.mxu0 %v9576_v9  ;;  %9099 = vmatprep.mubr.msk.f32.mxu0 %vm10176_vm0, %v10177_v5 }
 0x134   : > { %9578 = vmatprep.subr.bf16.mxu0 %v10175_v2 }
 0x136   : > { %9100 = vmatmul.mubr.f32.gmra.mrb[2].mxu0 %v3945_v4 }
 0x137   : > { %9102 = vmatprep.mubr.msk.f32.mxu0 %vm10176_vm0, %v10177_v5 }
 0x13a   : > { %9103 = vmatmul.mubr.f32.gmra.mrb[4].mxu0 %v3955_v11 }
 0x13b   : > { %9109 = vmatprep.mubr.msk.f32.mxu0 %vm10176_vm0, %v10177_v5 }
 0x13e   : > { %9110 = vmatmul.mubr.f32.vlgmr.msra.gmra.mrb[0].mxu0 %v11003_v17 }
 0x13f   : > { %9580 = vmatpush3.bf16.msra.mxu0 %v9579_v12  ;;  %9112 = vmatprep.mubr.msk.f32.mxu0 %vm10176_vm0, %v10177_v5 }
 0x140   : > { %9581 = vmatprep.subr.bf16.mxu0 %v10175_v2 }
 0x142   : > { %9113 = vmatmul.mubr.f32.gmra.mrb[2].mxu0 %v11013_v1 }
 0x143   : > { %9115 = vmatprep.mubr.msk.f32.mxu0 %vm10176_vm0, %v10177_v5 }
 0x146   : > { %9116 = vmatmul.mubr.f32.gmra.mrb[4].mxu0 %v11023_v8 }
 0x147   : > { %9122 = vmatprep.mubr.msk.f32.mxu0 %vm10176_vm0, %v10177_v5 }
 0x14a   : > { %9123 = vmatmul.mubr.f32.vlgmr.msra.gmra.mrb[0].mxu0 %v3932_v33 }
 0x14b   : > { %9583 = vmatpush3.bf16.msra.mxu0 %v11017_v60  ;;  %9125 = vmatprep.mubr.msk.f32.mxu0 %vm10176_vm0, %v10177_v5 }
 0x14c   : > { %9584 = vmatprep.subr.bf16.mxu0 %v10175_v2 }
 0x14e   : > { %9126 = vmatmul.mubr.f32.gmra.mrb[2].mxu0 %v3942_v16 }
 0x14f   : > { %9128 = vmatprep.mubr.msk.f32.mxu0 %vm10176_vm0, %v10177_v5 }
 0x152   : > { %9129 = vmatmul.mubr.f32.gmra.mrb[4].mxu0 %v3952_v20 }
 0x153   : > { %9135 = vmatprep.mubr.msk.f32.mxu0 %vm10176_vm0, %v10177_v5 }
 0x156   : > { %9136 = vmatmul.mubr.f32.vlgmr.msra.gmra.mrb[0].mxu0 %v3933_v48 }
 0x157   : > { %9586 = vmatpush3.bf16.msra.mxu0 %v9585_v23  ;;  %9138 = vmatprep.mubr.msk.f32.mxu0 %vm10176_vm0, %v10177_v5 }
 0x158   : > { %9587 = vmatprep.subr.bf16.mxu0 %v10175_v2 }
 0x15a   : > { %9139 = vmatmul.mubr.f32.gmra.mrb[2].mxu0 %v3943_v25 }
 0x15b   : > { %9141 = vmatprep.mubr.msk.f32.mxu0 %vm10176_vm0, %v10177_v5 }
 0x15e   : > { %9142 = vmatmul.mubr.f32.gmra.mrb[4].mxu0 %v3953_v51 }
 0x15f   : > { %9148 = vmatprep.mubr.msk.f32.mxu0 %vm10176_vm0, %v10177_v5 }
 0x162   : > { %9149 = vmatmul.mubr.f32.vlgmr.msra.gmra.mrb[0].mxu0 %v11003_v17 }
 0x163   : > { %9589 = vmatpush3.bf16.msra.mxu0 %v11017_v60  ;;  %9151 = vmatprep.mubr.msk.f32.mxu0 %vm10176_vm0, %v10177_v5 }
 0x166   : > { %9152 = vmatmul.mubr.f32.gmra.mrb[2].mxu0 %v11013_v1 }
 0x167   : > { %9154 = vmatprep.mubr.msk.f32.mxu0 %vm10176_vm0, %v10177_v5 }
 0x16a   : > { %9155 = vmatmul.mubr.f32.gmra.mrb[4].mxu0 %v11023_v8 }
 0x16b   : > { %9161 = vmatprep.mubr.msk.f32.mxu0 %vm10176_vm0, %v10177_v5 }
 0x16e   : > { %9162 = vmatmul.mubr.f32.vlgmr.msra.gmra.mrb[0].mxu0 %v11003_v17 }
 0x16f   : > { %9164 = vmatprep.mubr.msk.f32.mxu0 %vm10176_vm0, %v10177_v5 }
 0x172   : > { %9165 = vmatmul.mubr.f32.gmra.mrb[2].mxu0 %v11013_v1 }
 0x173   : > { %9167 = vmatprep.mubr.msk.f32.mxu0 %vm10176_vm0, %v10177_v5  ;;  %v11093_v5 = vpack.c.bf16 %v4468_v40, %v4465_v3  ;;  %vm4430_vm0 = vcmp.lt.s32.totalorder %v4424_v21, 64  ;;  %v8232_v21 = vld [vmem:[%s11323_s5 + $0x10] sm:$0xff] }
 0x174   : > { %vm4433_vm9 = vmand %vm4427_vm15, %vm4430_vm0 }
 0x175   : > { %9591 = vmatprep.subr.bf16.mxu1 %v11093_v5 }
 0x176   : > { %9168 = vmatmul.mubr.f32.gmra.mrb[4].mxu0 %v11023_v8  ;;  %9593 = vmatpush3.bf16.msra.mxu1 %v11093_v5 }
 0x177   : > { %9595 = vmatprep.subr.bf16.mxu1 %v11099_v32 }
 0x19f   : > { %v1778_v2 = vpop.f32.mrb[0].mxu1 }
 0x1a0   : > { %v8799_v24 = vpop.f32.mrb[1].mxu1  ;;  %v9758_v29 = vadd.f32 %v8216_v57, %v1778_v2 }
 0x1a3   : > { %v1784_v27 = vpop.f32.mrb[2].mxu1 }
 0x1a4   : > { %v8802_v6 = vpop.f32.mrb[3].mxu1  ;;  %v9760_v17 = vadd.f32 %v8216_v57, %v1784_v27 }
 0x1a7   : > { %v1790_v35 = vpop.f32.mrb[4].mxu1 }
 0x1a8   : > { %v8805_v36 = vpop.f32.mrb[5].mxu1  ;;  %v9762_v60 = vadd.f32 %v8216_v57, %v1790_v35 }
 0x241   : > { %v4393_v45 = vpop.f32.mrb[0].mxu0 }
 0x242   : > { %v9759_v59 = vadd.f32 %v9758_v29, %v4393_v45  ;;  %v9163_v15 = vpop.f32.mrb[1].mxu0 }
 0x244   : > { %v4412_v18 = vmax.f32 %v9759_v59, 0.0 }
 0x245   : > { %v4399_v52 = vpop.f32.mrb[2].mxu0 }
 0x246   : > { %v11108_v13 = vsel %vm4431_vm11, %v4412_v18, 0.0  ;;  %v9761_v33 = vadd.f32 %v9760_v17, %v4399_v52  ;;  %v9166_v1 = vpop.f32.mrb[3].mxu0  ;;  %v4981_v52 = vand.u32 4294901760, %v8232_v21 }
 0x247   : > { %v4455_v55 = vrot.slane %v11108_v13, 1  ;;  %v4971_v62 = vrot.slane %v11108_v13, 2  ;;  %v5487_v16 = vrot.slane %v11108_v13, 3  ;;  %v6003_v8 = vrot.slane %v11108_v13, 4 }
 0x248   : > { %v4413_v38 = vmax.f32 %v9761_v33, 0.0  ;;  %v6519_v19 = vrot.slane %v11108_v13, 5  ;;  %v7035_v58 = vrot.slane %v11108_v13, 6  ;;  %v7551_v29 = vrot.slane %v11108_v13, 7 }
 0x249   : > { %v4405_v48 = vpop.f32.mrb[4].mxu0  ;;  %v5069_v33 = vsub.f32 %v8232_v21, %v4981_v52  ;;  %v8236_v21 = vld [vmem:[%s11323_s5 + $0x30] sm:$0xff] }
 0x24a   : > { %v4441_v14 = vsel %vm4432_vm14, %v4413_v38, 0.0  ;;  %v9763_v49 = vadd.f32 %v9762_v60, %v4405_v48  ;;  %v9169_v22 = vpop.f32.mrb[5].mxu0 }
 0x24b   : > { %v4456_v25 = vrot.slane %v4441_v14, 1  ;;  %v4972_v20 = vrot.slane %v4441_v14, 2  ;;  %v5488_v28 = vrot.slane %v4441_v14, 3  ;;  %v6004_v31 = vrot.slane %v4441_v14, 4 }
 0x24c   : > { %v4414_v47 = vmax.f32 %v9763_v49, 0.0  ;;  %v6520_v53 = vrot.slane %v4441_v14, 5  ;;  %v7036_v30 = vrot.slane %v4441_v14, 6  ;;  %v7552_v42 = vrot.slane %v4441_v14, 7 }
 0x24d   : > { %v4457_v63 = vsel %vm459_vm1, %v4455_v55, %v4456_v25  ;;  %v4973_v51 = vsel %vm1025_vm5, %v4971_v62, %v4972_v20  ;;  %v11117_v9 = vsel %vm1590_vm3, %v5487_v16, %v5488_v28  ;;  %v11120_v4 = vsel %vm2155_vm4, %v6003_v8, %v6004_v31 }
 0x24e   : > { %v4442_v7 = vsel %vm4433_vm9, %v4414_v47, 0.0  ;;  %v4460_v11 = vsel %vm467_vm2, %v4457_v63, 0  ;;  %v11140_v34 = vsel %vm2720_vm6, %v6519_v19, %v6520_v53  ;;  %v11148_v45 = vsel %vm3285_vm7, %v7035_v58, %v7036_v30 }
 0x24f   : > { %v4458_v12 = vrot.slane %v4442_v7, 1  ;;  %v4974_v23 = vrot.slane %v4442_v7, 2  ;;  %v5490_v2 = vrot.slane %v4442_v7, 3  ;;  %v11123_v24 = vand.u32 4294901760, %v4460_v11 }
 0x250   : > { %v6006_v35 = vrot.slane %v4442_v7, 4  ;;  %v6522_v50 = vrot.slane %v4442_v7, 5  ;;  %v7038_v54 = vrot.slane %v4442_v7, 6  ;;  %v11154_v15 = vsel %vm3850_vm8, %v7551_v29, %v7552_v42 }
 0x251   : > { %v4459_v27 = vsel %vm459_vm1, %v4456_v25, %v4458_v12  ;;  %v4975_v6 = vsel %vm1025_vm5, %v4972_v20, %v4974_v23  ;;  %v4532_v36 = vsub.f32 %v4460_v11, %v11123_v24  ;;  %v11130_v39 = vsel %vm1590_vm3, %v5488_v28, %v5490_v2  ;;  %v8234_v12 = vld [vmem:[%s11323_s5 + $0x20] sm:$0xff]  ;;  %v8235_v23 = vld [vmem:[%s11323_s5 + $0x28] sm:$0xff] }
 0x252   : > { %v4462_v37 = vsel %vm467_vm2, %v4459_v27, 0  ;;  %v11136_v26 = vsel %vm2155_vm4, %v6004_v31, %v6006_v35  ;;  %v11145_v43 = vsel %vm2720_vm6, %v6520_v53, %v6522_v50  ;;  %v11151_v59 = vsel %vm3285_vm7, %v7036_v30, %v7038_v54 }
 0x253   : > { %v11132_v3 = vand.u32 4294901760, %v4462_v37  ;;  %v4533_v40 = vand.u32 4294901760, %v4532_v36  ;;  %v7554_v17 = vrot.slane %v4442_v7, 7  ;;  %v5070_v38 = vand.u32 4294901760, %v5069_v33 }
 0x254   : > { %v4978_v48 = vsel %vm467_vm2, %v4975_v6, 0  ;;  %v5497_v2 = vand.u32 4294901760, %v8234_v12  ;;  %v5492_v27 = vsel %vm467_vm2, %v11117_v9, 0 }
 0x255   : > { %v4542_v41 = vsub.f32 %v4462_v37, %v11132_v3  ;;  %v4534_v10 = vsub.f32 %v4532_v36, %v4533_v40  ;;  %v11160_v18 = vsel %vm3850_vm8, %v7552_v42, %v7554_v17  ;;  %v5071_v8 = vsub.f32 %v5069_v33, %v5070_v38 }
 0x256   : > { %v11181_v49 = vand.u32 4294901760, %v4978_v48  ;;  %v5585_v6 = vsub.f32 %v8234_v12, %v5497_v2 }
 0x257   : > { %v4543_v46 = vand.u32 4294901760, %v4542_v41  ;;  %v4535_v56 = vand.u32 4294901760, %v4534_v10 }
 0x258   : > { %v5058_v20 = vsub.f32 %v4978_v48, %v11181_v49  ;;  %v5586_v37 = vand.u32 4294901760, %v5585_v6  ;;  %v6010_v48 = vsel %vm467_vm2, %v11136_v26, 0 }
 0x259   : > { %v4544_v57 = vsub.f32 %v4542_v41, %v4543_v46  ;;  %9174 = vmatprep.mubr.f32.mxu1 %v4535_v56 }
 0x25a   : > { %v5059_v47 = vand.u32 4294901760, %v5058_v20  ;;  %v5587_v10 = vsub.f32 %v5585_v6, %v5586_v37 }
 0x25b   : > { %v4545_v61 = vand.u32 4294901760, %v4544_v57 }
 0x25c   : > { %v5588_v19 = vand.u32 4294901760, %v5587_v10 }
 0x25d   : > { %9175 = vmatmul.mubr.f32.vlgmr.msra.gmra.mrb[6].mxu1 %v4545_v61 }
 0x25e   : > { %9597 = vmatpush3.bf16.msra.mxu1 %v11099_v32  ;;  %9181 = vmatprep.mubr.f32.mxu1 %v11123_v24  ;;  %v8233_v32 = vld [vmem:[%s11323_s5 + $0x18] sm:$0xff] }
 0x25f   : > { %9599 = vmatprep.subr.bf16.mxu1 %v11097_v0  ;;  %v4984_v13 = vand.u32 4294901760, %v8233_v32 }
 0x261   : > { %v5076_v1 = vsub.f32 %v8233_v32, %v4984_v13  ;;  %v9614_v16 = vpack.c.bf16 %v4984_v13, %v4981_v52  ;;  %v8237_v32 = vld [vmem:[%s11323_s5 + $0x38] sm:$0xff]  ;;  %v6013_v52 = vand.u32 4294901760, %v8236_v21 }
 0x262   : > { %v6016_v13 = vand.u32 4294901760, %v8237_v32 }
 0x263   : > { %v5077_v55 = vand.u32 4294901760, %v5076_v1  ;;  %v9622_v11 = vpack.c.bf16 %v5076_v1, %v5069_v33  ;;  %v6101_v33 = vsub.f32 %v8236_v21, %v6013_v52  ;;  %v7040_v21 = vsel %vm467_vm2, %v11148_v45, 0 }
 0x265   : > { %9182 = vmatmul.mubr.f32.vlgmr.msra.gmra.mrb[6].mxu1 %v11132_v3  ;;  %v5078_v14 = vsub.f32 %v5076_v1, %v5077_v55  ;;  %v6108_v1 = vsub.f32 %v8237_v32, %v6016_v13 }
 0x266   : > { %9601 = vmatpush3.bf16.msra.mxu1 %v11097_v0  ;;  %9188 = vmatprep.mubr.f32.mxu1 %v4532_v36  ;;  %v4976_v0 = vsel %vm467_vm2, %v4973_v51, 0  ;;  %v5060_v51 = vsub.f32 %v5058_v20, %v5059_v47  ;;  %v11198_v36 = vand.u32 4294901760, %v5492_v27 }
 0x267   : > { %9603 = vmatprep.subr.bf16.mxu1 %v11093_v5  ;;  %v11174_v60 = vand.u32 4294901760, %v4976_v0  ;;  %v5079_v25 = vand.u32 4294901760, %v5078_v14 }
 0x268   : > { %v5061_v7 = vand.u32 4294901760, %v5060_v51  ;;  %v9670_v51 = vpack.c.bf16 %v6108_v1, %v6101_v33 }
 0x269   : > { %v5048_v62 = vsub.f32 %v4976_v0, %v11174_v60  ;;  %v6008_v0 = vsel %vm467_vm2, %v11120_v4, 0  ;;  %v11226_v4 = vand.u32 4294901760, %v6010_v48 }
 0x26b   : > { %v5049_v22 = vand.u32 4294901760, %v5048_v62 }
 0x26d   : > { %9189 = vmatmul.mubr.f32.vlgmr.msra.gmra.mrb[6].mxu1 %v4542_v41  ;;  %v5050_v28 = vsub.f32 %v5048_v62, %v5049_v22  ;;  %v5494_v41 = vsel %vm467_vm2, %v11130_v39, 0 }
 0x26e   : > { %9605 = vmatpush3.bf16.msra.mxu1 %v11093_v5  ;;  %9195 = vmatprep.mubr.f32.mxu1 %v4533_v40  ;;  %v5564_v40 = vsub.f32 %v5492_v27, %v11198_v36  ;;  %v11204_v9 = vand.u32 4294901760, %v5494_v41 }
 0x26f   : > { %9607 = vmatprep.subr.bf16.mxu1 %v11102_v44  ;;  %v5051_v63 = vand.u32 4294901760, %v5050_v28 }
 0x270   : > { %v5574_v30 = vsub.f32 %v5494_v41, %v11204_v9 }
 0x272   : > { %v5575_v57 = vand.u32 4294901760, %v5574_v30 }
 0x274   : > { %v5576_v58 = vsub.f32 %v5574_v30, %v5575_v57 }
 0x275   : > { %9196 = vmatmul.mubr.f32.vlgmr.msra.gmra.mrb[6].mxu1 %v4543_v46  ;;  %v5565_v46 = vand.u32 4294901760, %v5564_v40 }
 0x276   : > { %9609 = vmatpush3.bf16.msra.mxu1 %v11102_v44  ;;  %9202 = vmatprep.mubr.f32.mxu1 %v11123_v24  ;;  %v5072_v44 = vand.u32 4294901760, %v5071_v8  ;;  %v5577_v29 = vand.u32 4294901760, %v5576_v58  ;;  %v8240_v58 = vld [vmem:[%s11323_s5 + $0x50] sm:$0xff] }
 0x277   : > { %9611 = vmatprep.subr.bf16.mxu1 %v11093_v5  ;;  %v5566_v42 = vsub.f32 %v5564_v40, %v5565_v46 }
 0x278   : > { %v9618_v31 = vpack.c.bf16 %v5079_v25, %v5072_v44  ;;  %v6090_v25 = vsub.f32 %v6010_v48, %v11226_v4 }
 0x279   : > { %v5567_v39 = vand.u32 4294901760, %v5566_v42 }
 0x27d   : > { %9203 = vmatmul.mubr.f32.vlgmr.msra.gmra.mrb[6].mxu1 %v11132_v3 }
 0x27e   : > { %9613 = vmatpush3.bf16.msra.mxu1 %v11093_v5  ;;  %9209 = vmatprep.mubr.f32.mxu1 %v11123_v24  ;;  %v9630_v5 = vpack.c.bf16 %v5077_v55, %v5070_v38  ;;  %v5500_v24 = vand.u32 4294901760, %v8235_v23  ;;  %v6102_v38 = vand.u32 4294901760, %v6101_v33  ;;  %v6109_v55 = vand.u32 4294901760, %v6108_v1 }
 0x27f   : > { %9615 = vmatprep.subr.bf16.mxu1 %v9614_v16 }
 0x280   : > { %v5592_v35 = vsub.f32 %v8235_v23, %v5500_v24  ;;  %v9638_v53 = vpack.c.bf16 %v5500_v24, %v5497_v2  ;;  %v6103_v8 = vsub.f32 %v6101_v33, %v6102_v38  ;;  %v6110_v14 = vsub.f32 %v6108_v1, %v6109_v55 }
 0x281   : > { %v6524_v2 = vsel %vm467_vm2, %v11140_v34, 0 }
 0x282   : > { %v9646_v61 = vpack.c.bf16 %v5592_v35, %v5585_v6  ;;  %v6111_v44 = vand.u32 4294901760, %v6110_v14  ;;  %v11242_v6 = vand.u32 4294901760, %v6524_v2 }
 0x285   : > { %9210 = vmatmul.mubr.f32.vlgmr.msra.gmra.mrb[6].mxu1 %v11132_v3  ;;  %v5593_v3 = vand.u32 4294901760, %v5592_v35 }
 0x286   : > { %9617 = vmatpush3.bf16.msra.mxu1 %v9614_v16  ;;  %9216 = vmatprep.mubr.f32.mxu1 %v5051_v63 }
 0x287   : > { %9619 = vmatprep.subr.bf16.mxu1 %v9618_v31  ;;  %v5594_v50 = vsub.f32 %v5592_v35, %v5593_v3  ;;  %v9654_v17 = vpack.c.bf16 %v5593_v3, %v5586_v37  ;;  %v6596_v37 = vsub.f32 %v6524_v2, %v11242_v6  ;;  %v6526_v3 = vsel %vm467_vm2, %v11145_v43, 0 }
 0x288   : > { %v11248_v34 = vand.u32 4294901760, %v6526_v3 }
 0x289   : > { %v5595_v56 = vand.u32 4294901760, %v5594_v50  ;;  %v6597_v10 = vand.u32 4294901760, %v6596_v37 }
 0x28b   : > { %v9642_v54 = vpack.c.bf16 %v5595_v56, %v5588_v19  ;;  %v6598_v19 = vsub.f32 %v6596_v37, %v6597_v10 }
 0x28d   : > { %9217 = vmatmul.mubr.f32.vlgmr.msra.gmra.mrb[6].mxu1 %v5061_v7  ;;  %v9678_v7 = vpack.c.bf16 %v6109_v55, %v6102_v38  ;;  %v6599_v43 = vand.u32 4294901760, %v6598_v19  ;;  %v8231_v19 = vld [vmem:[%s11324_s6] ss:$0 sm:$0xff] }
 0x28e   : > { %9621 = vmatpush3.bf16.msra.mxu1 %v9618_v31  ;;  %9223 = vmatprep.mubr.f32.mxu1 %v11174_v60  ;;  %v6091_v31 = vand.u32 4294901760, %v6090_v25 }
 0x28f   : > { %9623 = vmatprep.subr.bf16.mxu1 %v9622_v11 }
 0x295   : > { %9224 = vmatmul.mubr.f32.vlgmr.msra.gmra.mrb[6].mxu1 %v11181_v49 }
 0x296   : > { %9625 = vmatpush3.bf16.msra.mxu1 %v9622_v11  ;;  %9230 = vmatprep.mubr.f32.mxu1 %v5048_v62  ;;  %v8238_v11 = vld [vmem:[%s11323_s5 + $0x40] sm:$0xff] }
 0x297   : > { %9627 = vmatprep.subr.bf16.mxu1 %v9614_v16  ;;  %v6529_v12 = vand.u32 4294901760, %v8238_v11 }
 0x299   : > { %v6617_v24 = vsub.f32 %v8238_v11, %v6529_v12 }
 0x29b   : > { %v6618_v35 = vand.u32 4294901760, %v6617_v24 }
 0x29d   : > { %9231 = vmatmul.mubr.f32.vlgmr.msra.gmra.mrb[6].mxu1 %v5058_v20  ;;  %v6619_v41 = vsub.f32 %v6617_v24, %v6618_v35 }
 0x29e   : > { %9629 = vmatpush3.bf16.msra.mxu1 %v9614_v16  ;;  %9237 = vmatprep.mubr.f32.mxu1 %v5049_v22  ;;  %v6104_v22 = vand.u32 4294901760, %v6103_v8 }
 0x29f   : > { %9631 = vmatprep.subr.bf16.mxu1 %v9630_v5  ;;  %v6620_v50 = vand.u32 4294901760, %v6619_v41 }
 0x2a0   : > { %v9666_v28 = vpack.c.bf16 %v6111_v44, %v6104_v22 }
 0x2a5   : > { %9238 = vmatmul.mubr.f32.vlgmr.msra.gmra.mrb[6].mxu1 %v5059_v47  ;;  %v6092_v47 = vsub.f32 %v6090_v25, %v6091_v31 }
 0x2a6   : > { %9633 = vmatpush3.bf16.msra.mxu1 %v9630_v5  ;;  %9244 = vmatprep.mubr.f32.mxu1 %v11174_v60  ;;  %v8239_v5 = vld [vmem:[%s11323_s5 + $0x48] sm:$0xff] }
 0x2a7   : > { %9635 = vmatprep.subr.bf16.mxu1 %v9614_v16  ;;  %v6093_v63 = vand.u32 4294901760, %v6092_v47  ;;  %v6532_v23 = vand.u32 4294901760, %v8239_v5 }
 0x2a9   : > { %v6624_v27 = vsub.f32 %v8239_v5, %v6532_v23 }
 0x2ad   : > { %9245 = vmatmul.mubr.f32.vlgmr.msra.gmra.mrb[6].mxu1 %v11181_v49 }
 0x2ae   : > { %9637 = vmatpush3.bf16.msra.mxu1 %v9614_v16  ;;  %9251 = vmatprep.mubr.f32.mxu1 %v11174_v60  ;;  %v11220_v60 = vand.u32 4294901760, %v6008_v0  ;;  %v9662_v16 = vpack.c.bf16 %v6016_v13, %v6013_v52  ;;  %v11264_v13 = vand.u32 4294901760, %v7040_v21 }
 0x2af   : > { %9639 = vmatprep.subr.bf16.mxu1 %v9638_v53 }
 0x2b0   : > { %v6080_v62 = vsub.f32 %v6008_v0, %v11220_v60  ;;  %v7112_v1 = vsub.f32 %v7040_v21, %v11264_v13 }
 0x2b2   : > { %v7113_v48 = vand.u32 4294901760, %v7112_v1 }
 0x2b5   : > { %9252 = vmatmul.mubr.f32.vlgmr.msra.gmra.mrb[6].mxu1 %v11181_v49  ;;  %v6081_v49 = vand.u32 4294901760, %v6080_v62 }
 0x2b6   : > { %9641 = vmatpush3.bf16.msra.mxu1 %v9638_v53  ;;  %9258 = vmatprep.mubr.f32.mxu1 %v5567_v39 }
 0x2b7   : > { %9643 = vmatprep.subr.bf16.mxu1 %v9642_v54  ;;  %v6082_v20 = vsub.f32 %v6080_v62, %v6081_v49 }
 0x2b9   : > { %v6083_v26 = vand.u32 4294901760, %v6082_v20 }
 0x2bd   : > { %9259 = vmatmul.mubr.f32.vlgmr.msra.gmra.mrb[6].mxu1 %v5577_v29  ;;  %v8241_v29 = vld [vmem:[%s11323_s5 + $0x58] sm:$0xff] }
 0x2be   : > { %9645 = vmatpush3.bf16.msra.mxu1 %v9642_v54  ;;  %9265 = vmatprep.mubr.f32.mxu1 %v11198_v36 }
 0x2bf   : > { %9647 = vmatprep.subr.bf16.mxu1 %v9646_v61 }
 0x2c5   : > { %9266 = vmatmul.mubr.f32.vlgmr.msra.gmra.mrb[6].mxu1 %v11204_v9 }
 0x2c6   : > { %9649 = vmatpush3.bf16.msra.mxu1 %v9646_v61  ;;  %9272 = vmatprep.mubr.f32.mxu1 %v5564_v40  ;;  %v9686_v40 = vpack.c.bf16 %v6532_v23, %v6529_v12  ;;  %v7045_v61 = vand.u32 4294901760, %v8240_v58 }
 0x2c7   : > { %9651 = vmatprep.subr.bf16.mxu1 %v9638_v53 }
 0x2c8   : > { %v7133_v32 = vsub.f32 %v8240_v58, %v7045_v61 }
 0x2ca   : > { %v7134_v0 = vand.u32 4294901760, %v7133_v32 }
 0x2cc   : > { %v7135_v55 = vsub.f32 %v7133_v32, %v7134_v0 }
 0x2cd   : > { %9273 = vmatmul.mubr.f32.vlgmr.msra.gmra.mrb[6].mxu1 %v5574_v30 }
 0x2ce   : > { %9653 = vmatpush3.bf16.msra.mxu1 %v9638_v53  ;;  %9279 = vmatprep.mubr.f32.mxu1 %v5565_v46  ;;  %v6606_v46 = vsub.f32 %v6526_v3, %v11248_v34 }
 0x2cf   : > { %9655 = vmatprep.subr.bf16.mxu1 %v9654_v17 }
 0x2d0   : > { %v6607_v30 = vand.u32 4294901760, %v6606_v46 }
 0x2d2   : > { %v6608_v42 = vsub.f32 %v6606_v46, %v6607_v30 }
 0x2d4   : > { %v6609_v54 = vand.u32 4294901760, %v6608_v42 }
 0x2d5   : > { %9280 = vmatmul.mubr.f32.vlgmr.msra.gmra.mrb[6].mxu1 %v5575_v57  ;;  %v9694_v57 = vpack.c.bf16 %v6624_v27, %v6617_v24  ;;  %v7558_v24 = vsel %vm467_vm2, %v11160_v18, 0 }
 0x2d6   : > { %9657 = vmatpush3.bf16.msra.mxu1 %v9654_v17  ;;  %9286 = vmatprep.mubr.f32.mxu1 %v11198_v36  ;;  %v7048_v17 = vand.u32 4294901760, %v8241_v29 }
 0x2d7   : > { %9659 = vmatprep.subr.bf16.mxu1 %v9638_v53 }
 0x2d8   : > { %v7140_v52 = vsub.f32 %v8241_v29, %v7048_v17  ;;  %v9710_v38 = vpack.c.bf16 %v7048_v17, %v7045_v61 }
 0x2da   : > { %v7141_v33 = vand.u32 4294901760, %v7140_v52  ;;  %v9718_v20 = vpack.c.bf16 %v7140_v52, %v7133_v32 }
 0x2dd   : > { %9287 = vmatmul.mubr.f32.vlgmr.msra.gmra.mrb[6].mxu1 %v11204_v9 }
 0x2de   : > { %9661 = vmatpush3.bf16.msra.mxu1 %v9638_v53  ;;  %9293 = vmatprep.mubr.f32.mxu1 %v11198_v36  ;;  %v6625_v36 = vand.u32 4294901760, %v6624_v27 }
 0x2df   : > { %9663 = vmatprep.subr.bf16.mxu1 %v9662_v16 }
 0x2e0   : > { %v6626_v53 = vsub.f32 %v6624_v27, %v6625_v36  ;;  %v9702_v39 = vpack.c.bf16 %v6625_v36, %v6618_v35  ;;  %v7637_v36 = vand.u32 4294901760, %v7558_v24 }
 0x2e5   : > { %9294 = vmatmul.mubr.f32.vlgmr.msra.gmra.mrb[6].mxu1 %v11204_v9  ;;  %v6627_v9 = vand.u32 4294901760, %v6626_v53 }
 0x2e6   : > { %9665 = vmatpush3.bf16.msra.mxu1 %v9662_v16  ;;  %9300 = vmatprep.mubr.f32.mxu1 %v6083_v26  ;;  %v8243_v26 = vld [vmem:[%s11323_s5 + $0x68] sm:$0xff] }
 0x2e7   : > { %9667 = vmatprep.subr.bf16.mxu1 %v9666_v28  ;;  %v9690_v56 = vpack.c.bf16 %v6627_v9, %v6620_v50 }
 0x2ed   : > { %9301 = vmatmul.mubr.f32.vlgmr.msra.gmra.mrb[6].mxu1 %v6093_v63  ;;  %v7564_v63 = vand.u32 4294901760, %v8243_v26 }
 0x2ee   : > { %9669 = vmatpush3.bf16.msra.mxu1 %v9666_v28  ;;  %9307 = vmatprep.mubr.f32.mxu1 %v11220_v60  ;;  %v9726_v28 = vpack.c.bf16 %v7141_v33, %v7134_v0 }
 0x2ef   : > { %9671 = vmatprep.subr.bf16.mxu1 %v9670_v51  ;;  %v7656_v11 = vsub.f32 %v8243_v26, %v7564_v63 }
 0x2f1   : > { %v7657_v23 = vand.u32 4294901760, %v7656_v11 }
 0x2f3   : > { %v7658_v35 = vsub.f32 %v7656_v11, %v7657_v23 }
 0x2f5   : > { %9308 = vmatmul.mubr.f32.vlgmr.msra.gmra.mrb[6].mxu1 %v11226_v4  ;;  %v7659_v3 = vand.u32 4294901760, %v7658_v35 }
 0x2f6   : > { %9673 = vmatpush3.bf16.msra.mxu1 %v9670_v51  ;;  %9314 = vmatprep.mubr.f32.mxu1 %v6080_v62  ;;  %v7142_v62 = vsub.f32 %v7140_v52, %v7141_v33  ;;  %v7556_v51 = vsel %vm467_vm2, %v11154_v15, 0 }
 0x2f7   : > { %9675 = vmatprep.subr.bf16.mxu1 %v9662_v16  ;;  %v7627_v5 = vand.u32 4294901760, %v7556_v51 }
 0x2f8   : > { %v7143_v8 = vand.u32 4294901760, %v7142_v62 }
 0x2f9   : > { %v7628_v2 = vsub.f32 %v7556_v51, %v7627_v5 }
 0x2fd   : > { %9315 = vmatmul.mubr.f32.vlgmr.msra.gmra.mrb[6].mxu1 %v6090_v25 }
 0x2fe   : > { %9677 = vmatpush3.bf16.msra.mxu1 %v9662_v16  ;;  %9321 = vmatprep.mubr.f32.mxu1 %v6081_v49 }
 0x2ff   : > { %9679 = vmatprep.subr.bf16.mxu1 %v9678_v7 }
 0x305   : > { %9322 = vmatmul.mubr.f32.vlgmr.msra.gmra.mrb[6].mxu1 %v6091_v31  ;;  %v8242_v31 = vld [vmem:[%s11323_s5 + $0x60] sm:$0xff] }
 0x306   : > { %9681 = vmatpush3.bf16.msra.mxu1 %v9678_v7  ;;  %9328 = vmatprep.mubr.f32.mxu1 %v11220_v60  ;;  %v7561_v47 = vand.u32 4294901760, %v8242_v31 }
 0x307   : > { %9683 = vmatprep.subr.bf16.mxu1 %v9662_v16 }
 0x308   : > { %v7649_v7 = vsub.f32 %v8242_v31, %v7561_v47  ;;  %v9734_v27 = vpack.c.bf16 %v7564_v63, %v7561_v47 }
 0x30a   : > { %v7650_v12 = vand.u32 4294901760, %v7649_v7  ;;  %v9742_v9 = vpack.c.bf16 %v7656_v11, %v7649_v7 }
 0x30d   : > { %9329 = vmatmul.mubr.f32.vlgmr.msra.gmra.mrb[6].mxu1 %v11226_v4 }
 0x30e   : > { %9685 = vmatpush3.bf16.msra.mxu1 %v9662_v16  ;;  %9335 = vmatprep.mubr.f32.mxu1 %v11220_v60  ;;  %v7042_v60 = vsel %vm467_vm2, %v11151_v59, 0  ;;  %v7136_v16 = vand.u32 4294901760, %v7135_v55 }
 0x30f   : > { %9687 = vmatprep.subr.bf16.mxu1 %v9686_v40  ;;  %v11270_v45 = vand.u32 4294901760, %v7042_v60 }
 0x310   : > { %v9714_v49 = vpack.c.bf16 %v7143_v8, %v7136_v16 }
 0x311   : > { %v7122_v14 = vsub.f32 %v7042_v60, %v11270_v45 }
 0x313   : > { %v7123_v22 = vand.u32 4294901760, %v7122_v14 }
 0x315   : > { %9336 = vmatmul.mubr.f32.vlgmr.msra.gmra.mrb[6].mxu1 %v11226_v4  ;;  %v7114_v4 = vsub.f32 %v7112_v1, %v7113_v48  ;;  %v7124_v44 = vsub.f32 %v7122_v14, %v7123_v22 }
 0x316   : > { %9689 = vmatpush3.bf16.msra.mxu1 %v9686_v40  ;;  %9342 = vmatprep.mubr.f32.mxu1 %v6599_v43 }
 0x317   : > { %9691 = vmatprep.subr.bf16.mxu1 %v9690_v56  ;;  %v7115_v59 = vand.u32 4294901760, %v7114_v4  ;;  %v7125_v25 = vand.u32 4294901760, %v7124_v44 }
 0x31d   : > { %9343 = vmatmul.mubr.f32.vlgmr.msra.gmra.mrb[6].mxu1 %v6609_v54  ;;  %v10133_v54 = vld [vmem:[%s10305_s9 + $0x8] sm:$0xff] }
 0x31e   : > { %9693 = vmatpush3.bf16.msra.mxu1 %v9690_v56  ;;  %9349 = vmatprep.mubr.f32.mxu1 %v11242_v6 }
 0x31f   : > { %9695 = vmatprep.subr.bf16.mxu1 %v9694_v57 }
 0x325   : > { %9350 = vmatmul.mubr.f32.vlgmr.msra.gmra.mrb[6].mxu1 %v11248_v34 }
 0x326   : > { %9697 = vmatpush3.bf16.msra.mxu1 %v9694_v57  ;;  %9356 = vmatprep.mubr.f32.mxu1 %v6596_v37  ;;  %v7629_v37 = vand.u32 4294901760, %v7628_v2 }
 0x327   : > { %9699 = vmatprep.subr.bf16.mxu1 %v9686_v40 }
 0x328   : > { %v7630_v41 = vsub.f32 %v7628_v2, %v7629_v37 }
 0x32d   : > { %9357 = vmatmul.mubr.f32.vlgmr.msra.gmra.mrb[6].mxu1 %v6606_v46  ;;  %v9750_v46 = vpack.c.bf16 %v7657_v23, %v7650_v12 }
 0x32e   : > { %9701 = vmatpush3.bf16.msra.mxu1 %v9686_v40  ;;  %9363 = vmatprep.mubr.f32.mxu1 %v6597_v10  ;;  %v7631_v10 = vand.u32 4294901760, %v7630_v41 }
 0x32f   : > { %9703 = vmatprep.subr.bf16.mxu1 %v9702_v39 }
 0x335   : > { %9364 = vmatmul.mubr.f32.vlgmr.msra.gmra.mrb[6].mxu1 %v6607_v30 }
 0x336   : > { %9705 = vmatpush3.bf16.msra.mxu1 %v9702_v39  ;;  %9370 = vmatprep.mubr.f32.mxu1 %v11242_v6  ;;  %v10134_v39 = vld [vmem:[%s10305_s9] sm:$0xff] }
 0x337   : > { %9707 = vmatprep.subr.bf16.mxu1 %v9686_v40 }
 0x33d   : > { %9371 = vmatmul.mubr.f32.vlgmr.msra.gmra.mrb[6].mxu1 %v11248_v34 }
 0x33e   : > { %9709 = vmatpush3.bf16.msra.mxu1 %v9686_v40  ;;  %9377 = vmatprep.mubr.f32.mxu1 %v11242_v6  ;;  %v7651_v6 = vsub.f32 %v7649_v7, %v7650_v12  ;;  %v7638_v40 = vsub.f32 %v7558_v24, %v7637_v36 }
 0x33f   : > { %9711 = vmatprep.subr.bf16.mxu1 %v9710_v38 }
 0x340   : > { %v7652_v15 = vand.u32 4294901760, %v7651_v6 }
 0x342   : > { %v9738_v53 = vpack.c.bf16 %v7659_v3, %v7652_v15 }
 0x345   : > { %9378 = vmatmul.mubr.f32.vlgmr.msra.gmra.mrb[6].mxu1 %v11248_v34  ;;  %v7639_v34 = vand.u32 4294901760, %v7638_v40 }
 0x346   : > { %9713 = vmatpush3.bf16.msra.mxu1 %v9710_v38  ;;  %9384 = vmatprep.mubr.f32.mxu1 %v7115_v59 }
 0x347   : > { %9715 = vmatprep.subr.bf16.mxu1 %v9714_v49  ;;  %v7640_v18 = vsub.f32 %v7638_v40, %v7639_v34 }
 0x349   : > { %v7641_v50 = vand.u32 4294901760, %v7640_v18 }
 0x34d   : > { %9385 = vmatmul.mubr.f32.vlgmr.msra.gmra.mrb[6].mxu1 %v7125_v25 }
 0x34e   : > { %9717 = vmatpush3.bf16.msra.mxu1 %v9714_v49  ;;  %9391 = vmatprep.mubr.f32.mxu1 %v11264_v13 }
 0x34f   : > { %9719 = vmatprep.subr.bf16.mxu1 %v9718_v20 }
 0x355   : > { %9392 = vmatmul.mubr.f32.vlgmr.msra.gmra.mrb[6].mxu1 %v11270_v45 }
 0x356   : > { %9721 = vmatpush3.bf16.msra.mxu1 %v9718_v20  ;;  %9398 = vmatprep.mubr.f32.mxu1 %v7112_v1 }
 0x357   : > { %9723 = vmatprep.subr.bf16.mxu1 %v9710_v38 }
 0x35d   : > { %9399 = vmatmul.mubr.f32.vlgmr.msra.gmra.mrb[6].mxu1 %v7122_v14 }
 0x35e   : > { %9725 = vmatpush3.bf16.msra.mxu1 %v9710_v38  ;;  %9405 = vmatprep.mubr.f32.mxu1 %v7113_v48 }
 0x35f   : > { %9727 = vmatprep.subr.bf16.mxu1 %v9726_v28 }
 0x365   : > { %9406 = vmatmul.mubr.f32.vlgmr.msra.gmra.mrb[6].mxu1 %v7123_v22 }
 0x366   : > { %9729 = vmatpush3.bf16.msra.mxu1 %v9726_v28  ;;  %9412 = vmatprep.mubr.f32.mxu1 %v11264_v13 }
 0x367   : > { %9731 = vmatprep.subr.bf16.mxu1 %v9710_v38 }
 0x36d   : > { %9413 = vmatmul.mubr.f32.vlgmr.msra.gmra.mrb[6].mxu1 %v11270_v45 }
 0x36e   : > { %9733 = vmatpush3.bf16.msra.mxu1 %v9710_v38  ;;  %9419 = vmatprep.mubr.f32.mxu1 %v11264_v13 }
 0x36f   : > { %9735 = vmatprep.subr.bf16.mxu1 %v9734_v27 }
 0x375   : > { %9420 = vmatmul.mubr.f32.vlgmr.msra.gmra.mrb[6].mxu1 %v11270_v45 }
 0x376   : > { %9737 = vmatpush3.bf16.msra.mxu1 %v9734_v27  ;;  %9426 = vmatprep.mubr.f32.mxu1 %v7631_v10 }
 0x377   : > { %9739 = vmatprep.subr.bf16.mxu1 %v9738_v53 }
 0x37d   : > { %9427 = vmatmul.mubr.f32.vlgmr.msra.gmra.mrb[6].mxu1 %v7641_v50 }
 0x37e   : > { %9741 = vmatpush3.bf16.msra.mxu1 %v9738_v53  ;;  %9433 = vmatprep.mubr.f32.mxu1 %v7627_v5 }
 0x37f   : > { %9743 = vmatprep.subr.bf16.mxu1 %v9742_v9 }
 0x385   : > { %9434 = vmatmul.mubr.f32.vlgmr.msra.gmra.mrb[6].mxu1 %v7637_v36 }
 0x386   : > { %9745 = vmatpush3.bf16.msra.mxu1 %v9742_v9  ;;  %9440 = vmatprep.mubr.f32.mxu1 %v7628_v2 }
 0x387   : > { %9747 = vmatprep.subr.bf16.mxu1 %v9734_v27 }
 0x38d   : > { %9441 = vmatmul.mubr.f32.vlgmr.msra.gmra.mrb[6].mxu1 %v7638_v40 }
 0x38e   : > { %9749 = vmatpush3.bf16.msra.mxu1 %v9734_v27  ;;  %9447 = vmatprep.mubr.f32.mxu1 %v7629_v37 }
 0x38f   : > { %9751 = vmatprep.subr.bf16.mxu1 %v9750_v46 }
 0x395   : > { %9448 = vmatmul.mubr.f32.vlgmr.msra.gmra.mrb[6].mxu1 %v7639_v34 }
 0x396   : > { %9753 = vmatpush3.bf16.msra.mxu1 %v9750_v46  ;;  %9454 = vmatprep.mubr.f32.mxu1 %v7627_v5 }
 0x397   : > { %9755 = vmatprep.subr.bf16.mxu1 %v9734_v27 }
 0x39d   : > { %9455 = vmatmul.mubr.f32.vlgmr.msra.gmra.mrb[6].mxu1 %v7637_v36 }
 0x39e   : > { %9757 = vmatpush3.bf16.msra.mxu1 %v9734_v27  ;;  %9461 = vmatprep.mubr.f32.mxu1 %v7627_v5 }
 0x3a5   : > { %9462 = vmatmul.mubr.f32.vlgmr.msra.gmra.mrb[6].mxu1 %v7637_v36 }
 0x478   : > { %v9463_v56 = vpop.f32.mrb[6].mxu1 }
 0x479   : > { %v9764_v30 = vadd.f32 %v9463_v56, %v8231_v19  ;;  %v8052_v43 = vpop.f32.mrb[7].mxu1 }
 0x47a   : > { %v9765_v42 = vadd.f32 %v8231_v19, %v8052_v43 }
 0x47b   : > { %v8065_v57 = vadd.f32 %v10133_v54, %v9764_v30 }
 0x47c   : > { %v8064_v58 = vadd.f32 %v10134_v39, %v9765_v42 }
 0x47d   : > { %v8067_v29 = vmax.f32 %v8065_v57, 0.0 }
 0x47e   : > { %v8066_v61 = vmax.f32 %v8064_v58, 0.0 }
 0x47f   : > { %8069 = vst.msk [vmem:[%s430_s18 + $0x8] sm:$0xff] %vm467_vm2, %v8067_v29 }
 0x480   : > { %8068 = vst.msk [vmem:[%s430_s18] sm:$0xff] %vm467_vm2, %v8066_v61 }
 0x481 PF: > { %s17_s28 = sadd.s32 1, %s10173_s28   ;;  %s11326_s24 = smov %s10165_s26 }
 0x482   : > { %p14_p13 = scmp.ge.s32.totalorder %s17_s28, 10   ;;  %s11327_s25 = smov %s10169_s27 }
 0x483   : > { %s11328_s26 = smov %s11331_s29  ;;  %s11329_s27 = smov %s11335_s30 }
 0x484   :  { %16 = sbr.rel (!%p14_p13) target bundleno = 3 (0x3), region = 96 }

</bundles_post_ra>
